<compile_context>
chip_gen: v7x
topology: tpu7x:2x2x1
jax: 0.10.0
libtpu: 0.0.40
codegen_flags: <defaults>
</compile_context>

<pallas_src>
import math
import numpy as np
import jax
import jax.numpy as jnp
from jax import lax
from jax.experimental import pallas as pl
from jax.experimental.pallas import tpu as pltpu

# ---------------- model hyper-parameters (small, consistent with the module) ----------------
BATCH = 2
SEQ = 8
D_MODEL = 32
N_HEADS = 4
D_K = D_MODEL // N_HEADS
D_FF = 64
LN_EPS = 1e-6  # LayerNormalization eps


def _layernorm(x, alpha, bias):
    # Matches LayerNormalization: mean / unbiased std over last dim.
    # (eps moved inside the sqrt: 1/(sqrt(var)+eps) -> rsqrt(var+eps); negligible at 1e-6.)
    n = x.shape[-1]
    mean = jnp.mean(x, axis=-1, keepdims=True)
    var = jnp.sum((x - mean) ** 2, axis=-1, keepdims=True) * (1.0 / (n - 1))
    inv = lax.rsqrt(var + LN_EPS)                     # single EUP op on the serial chain
    return alpha * (x - mean) * inv + bias


# ---------------- Pallas kernel: full EncoderBlock forward, all batches at once -------------
def encoder_block_kernel(
    x_ref,        # (B*S, D)   f32 VMEM
    vlen_ref,     # (B,)       int32 SMEM  (per-batch number of valid keys)
    wqkv_ref,     # (D, 3D)    bf16  Wq(scaled) | Wk | Wv
    bqkv_ref,     # (1, 3D)    f32
    wo_ref,       # (D, D)     bf16
    bo_ref,       # (1, D)     f32
    w1_ref,       # (D, d_ff)  bf16
    b1_ref,       # (1, d_ff)  f32
    w2_ref,       # (d_ff, D)  bf16
    b2_ref,       # (1, D)     f32
    ln_ref,       # (4,)       f32 SMEM: [ln1_alpha, ln1_bias, ln2_alpha, ln2_bias]
    out_ref,      # (B*S, D)   f32 VMEM
    attn_ref,     # (B*S, D)   f32 VMEM scratch (per-batch attention rows, static offsets)
):
    x = x_ref[...]                                    # (B*S, D) f32
    a1, c1, a2, c2 = ln_ref[0], ln_ref[1], ln_ref[2], ln_ref[3]

    # ---------- residual connection 0: x + SelfAttention(LayerNorm(x)) ----------
    xn = _layernorm(x, a1, c1)

    # Fused QKV projection for all batch rows at once; scale folded into the Q columns.
    qkv = jnp.dot(xn.astype(jnp.bfloat16), wqkv_ref[...],
                  preferred_element_type=jnp.float32) + bqkv_ref[...]        # (B*S, 3D) f32

    for b in range(BATCH):                            # static unroll over batch
        qkv_b = qkv[b * SEQ:(b + 1) * SEQ]            # (S, 3D) sublane-aligned slice
        vlen = vlen_ref[b]                            # scalar int32 from SMEM
        # Build the key mask in-kernel (no O(S^2) HBM input / DMA).
        key_ok = lax.broadcasted_iota(jnp.int32, (SEQ, SEQ), 1) < vlen       # (S, S) bool

        attn_b = jnp.zeros((SEQ, D_MODEL), jnp.float32)
        for h in range(N_HEADS):                      # static unroll over heads
            q_h = qkv_b[:, h * D_K:(h + 1) * D_K]                                  # (S, d_k)
            k_h = qkv_b[:, D_MODEL + h * D_K: D_MODEL + (h + 1) * D_K]             # (S, d_k)
            v_h = qkv_b[:, 2 * D_MODEL + h * D_K: 2 * D_MODEL + (h + 1) * D_K]     # (S, d_k)

            # scores = (q/sqrt(d_k)) @ k^T, masked like masked_fill(mask==0, -1e9)
            scores = lax.dot_general(q_h, k_h, (((1,), (1,)), ((), ())),
                                     preferred_element_type=jnp.float32)           # (S, S)
            scores = jnp.where(key_ok, scores, -1e9)

            # softmax over keys (EUP reciprocal instead of a VPU divide chain)
            scores = scores - jnp.max(scores, axis=-1, keepdims=True)
            p = jnp.exp(scores)
            p = p * pl.reciprocal(jnp.sum(p, axis=-1, keepdims=True), approx=True)

            ctx_h = jnp.dot(p, v_h, preferred_element_type=jnp.float32)            # (S, d_k)
            # Fold the per-head context straight into the output projection:
            #   ctx @ Wo == sum_h ctx_h @ Wo[h*d_k:(h+1)*d_k, :]
            # (sublane-aligned weight slab; removes the lane-concat tree entirely)
            attn_b = attn_b + jnp.dot(ctx_h.astype(jnp.bfloat16),
                                      wo_ref[h * D_K:(h + 1) * D_K, :],
                                      preferred_element_type=jnp.float32)          # (S, D)

        # Sublane-aligned static-offset scratch write instead of a batch concatenate.
        attn_ref[b * SEQ:(b + 1) * SEQ, :] = attn_b

    x1 = x + attn_ref[...] + bo_ref[...]              # dropout == identity (eval mode)

    # ---------- residual connection 1: x1 + FFN(LayerNorm(x1)) ----------
    xn2 = _layernorm(x1, a2, c2)
    h1 = jnp.dot(xn2.astype(jnp.bfloat16), w1_ref[...],
                 preferred_element_type=jnp.float32) + b1_ref[...]
    h1 = jnp.maximum(h1, 0.0)                         # ReLU
    ff = jnp.dot(h1.astype(jnp.bfloat16), w2_ref[...],
                 preferred_element_type=jnp.float32) + b2_ref[...]
    out_ref[...] = x1 + ff                            # single store of the full tile


# ---------------- host wrapper: pack once, jit the per-call path ----------------
def make_encoder_block(params):
    """Returns a jitted fwd(x, valid_len) with all weight packing hoisted out of the call."""
    scale = 1.0 / math.sqrt(D_K)
    # Fused QKV weight (scale folded into the Q columns), cast to bf16 for the MXU.
    wqkv = jnp.concatenate([params["wq"] * scale, params["wk"], params["wv"]],
                           axis=1).astype(jnp.bfloat16)                      # (D, 3D)
    bqkv = jnp.concatenate([params["bq"] * scale, params["bk"], params["bv"]],
                           axis=0).reshape(1, 3 * D_MODEL).astype(jnp.float32)
    wo = params["wo"].astype(jnp.bfloat16)                                   # (D, D)
    bo = params["bo"].reshape(1, D_MODEL).astype(jnp.float32)
    w1 = params["w1"].astype(jnp.bfloat16)                                   # (D, d_ff)
    b1 = params["b1"].reshape(1, D_FF).astype(jnp.float32)
    w2 = params["w2"].astype(jnp.bfloat16)                                   # (d_ff, D)
    b2 = params["b2"].reshape(1, D_MODEL).astype(jnp.float32)
    ln = jnp.concatenate([params["ln1_a"], params["ln1_b"],
                          params["ln2_a"], params["ln2_b"]]).astype(jnp.float32)  # (4,)

    vmem = pl.BlockSpec(memory_space=pltpu.MemorySpace.VMEM)
    smem = pl.BlockSpec(memory_space=pltpu.MemorySpace.SMEM)

    call = pl.pallas_call(
        encoder_block_kernel,
        out_shape=jax.ShapeDtypeStruct((BATCH * SEQ, D_MODEL), jnp.float32),
        in_specs=[vmem, smem,                 # x_flat, valid_len
                  vmem, vmem,                 # wqkv, bqkv
                  vmem, vmem,                 # wo, bo
                  vmem, vmem, vmem, vmem,     # w1, b1, w2, b2
                  smem],                      # ln scalars
        out_specs=vmem,
        scratch_shapes=[pltpu.VMEM((BATCH * SEQ, D_MODEL), jnp.float32)],
    )

    @jax.jit
    def fwd(x, valid_len):
        # x: (B, S, D) f32; valid_len: (B,) int — padding-style src_mask
        # (src_mask[b, 0, q, k] == 1 iff k < valid_len[b]).
        x_flat = x.reshape(BATCH * SEQ, D_MODEL)
        out = call(x_flat, valid_len.astype(jnp.int32),
                   wqkv, bqkv, wo, bo, w1, b1, w2, b2, ln)
        return out.reshape(BATCH, SEQ, D_MODEL)

    return fwd


# ---------------- pure-JAX reference (for correctness check) ----------------
def reference(x, mask, p):
    def ln(t, a, b):
        mean = t.mean(-1, keepdims=True)
        var = ((t - mean) ** 2).sum(-1, keepdims=True) / (t.shape[-1] - 1)
        return a * (t - mean) / (jnp.sqrt(var) + LN_EPS) + b

    B, S, D = x.shape
    xn = ln(x, p["ln1_a"], p["ln1_b"])
    q = xn @ p["wq"] + p["bq"]
    k = xn @ p["wk"] + p["bk"]
    v = xn @ p["wv"] + p["bv"]

    def split(t):
        return t.reshape(B, S, N_HEADS, D_K).transpose(0, 2, 1, 3)

    qh, kh, vh = split(q), split(k), split(v)
    scores = jnp.einsum("bhqd,bhkd->bhqk", qh, kh) / math.sqrt(D_K)
    scores = jnp.where(mask == 0.0, -1e9, scores)
    attn = jax.nn.softmax(scores, axis=-1)
    ctx = jnp.einsum("bhqk,bhkd->bhqd", attn, vh)
    ctx = ctx.transpose(0, 2, 1, 3).reshape(B, S, D)
    x1 = x + ctx @ p["wo"] + p["bo"]

    xn2 = ln(x1, p["ln2_a"], p["ln2_b"])
    ff = jnp.maximum(xn2 @ p["w1"] + p["b1"], 0.0) @ p["w2"] + p["b2"]
    return x1 + ff


# ---------------- deterministic parameter init ----------------
def init_params(key):
    ks = jax.random.split(key, 12)
    s = 0.05
    return {
        "wq": s * jax.random.normal(ks[0], (D_MODEL, D_MODEL), jnp.float32),
        "bq": s * jax.random.normal(ks[1], (D_MODEL,), jnp.float32),
        "wk": s * jax.random.normal(ks[2], (D_MODEL, D_MODEL), jnp.float32),
        "bk": s * jax.random.normal(ks[3], (D_MODEL,), jnp.float32),
        "wv": s * jax.random.normal(ks[4], (D_MODEL, D_MODEL), jnp.float32),
        "bv": s * jax.random.normal(ks[5], (D_MODEL,), jnp.float32),
        "wo": s * jax.random.normal(ks[6], (D_MODEL, D_MODEL), jnp.float32),
        "bo": s * jax.random.normal(ks[7], (D_MODEL,), jnp.float32),
        "w1": s * jax.random.normal(ks[8], (D_MODEL, D_FF), jnp.float32),
        "b1": s * jax.random.normal(ks[9], (D_FF,), jnp.float32),
        "w2": s * jax.random.normal(ks[10], (D_FF, D_MODEL), jnp.float32),
        "b2": s * jax.random.normal(ks[11], (D_MODEL,), jnp.float32),
        # LayerNormalization initializes alpha=ones(1), bias=zeros(1)
        "ln1_a": jnp.ones((1,), jnp.float32),
        "ln1_b": jnp.zeros((1,), jnp.float32),
        "ln2_a": jnp.ones((1,), jnp.float32),
        "ln2_b": jnp.zeros((1,), jnp.float32),
    }


if __name__ == "__main__":
    key = jax.random.PRNGKey(0)
    k_x, k_p = jax.random.split(key)

    x = jax.random.normal(k_x, (BATCH, SEQ, D_MODEL), jnp.float32)
    params = init_params(k_p)

    # padding-style src mask: batch 0 attends to all 8 keys, batch 1 only to the first 6
    valid_len = jnp.asarray([SEQ, SEQ - 2], jnp.int32)

    fwd = make_encoder_block(params)                     # packing hoisted out of the call path
    out = jax.block_until_ready(fwd(x, valid_len))

    # Equivalent dense (B,1,S,S) mask for the pure-JAX reference.
    mask_np = np.zeros((BATCH, 1, SEQ, SEQ), np.float32)
    for b in range(BATCH):
        mask_np[b, 0, :, : int(valid_len[b])] = 1.0
    ref = jax.block_until_ready(reference(x, jnp.asarray(mask_np), params))

    if np.allclose(np.asarray(out), np.asarray(ref), rtol=2e-2, atol=2e-2):
        print("KERNEL_OK")
    else:
        diff = float(np.max(np.abs(np.asarray(out) - np.asarray(ref))))
        print(f"MISMATCH max_abs_diff={diff}")
</pallas_src>

<mosaic_0001>
module attributes {stable_mosaic.version = 11 : i64} {
  func.func @encoder_block_kernel(%arg0: memref<16x32xf32, #tpu.memory_space<vmem>>, %arg1: memref<2xi32, #tpu.memory_space<smem>>, %arg2: memref<32x96xbf16, #tpu.memory_space<vmem>>, %arg3: memref<1x96xf32, #tpu.memory_space<vmem>>, %arg4: memref<32x32xbf16, #tpu.memory_space<vmem>>, %arg5: memref<1x32xf32, #tpu.memory_space<vmem>>, %arg6: memref<32x64xbf16, #tpu.memory_space<vmem>>, %arg7: memref<1x64xf32, #tpu.memory_space<vmem>>, %arg8: memref<64x32xbf16, #tpu.memory_space<vmem>>, %arg9: memref<1x32xf32, #tpu.memory_space<vmem>>, %arg10: memref<4xf32, #tpu.memory_space<smem>>, %arg11: memref<16x32xf32, #tpu.memory_space<vmem>>, %arg12: memref<16x32xf32, #tpu.memory_space<vmem>>) attributes {dimension_semantics = [], scalar_prefetch = 0 : i64, scratch_operands = 1 : i64, tpu.core_type = #tpu.core_type<tc>} {
    %c0 = arith.constant 0 : index
    %c0_0 = arith.constant 0 : index
    %0 = vector.load %arg0[%c0, %c0_0] : memref<16x32xf32, #tpu.memory_space<vmem>>, vector<16x32xf32>
    %c0_1 = arith.constant 0 : index
    %1 = memref.load %arg10[%c0_1] : memref<4xf32, #tpu.memory_space<smem>>
    %c1 = arith.constant 1 : index
    %2 = memref.load %arg10[%c1] : memref<4xf32, #tpu.memory_space<smem>>
    %c2 = arith.constant 2 : index
    %3 = memref.load %arg10[%c2] : memref<4xf32, #tpu.memory_space<smem>>
    %c3 = arith.constant 3 : index
    %4 = memref.load %arg10[%c3] : memref<4xf32, #tpu.memory_space<smem>>
    %cst = arith.constant dense<0.000000e+00> : vector<16xf32>
    %5 = vector.multi_reduction <add>, %0, %cst [1] : vector<16x32xf32> to vector<16xf32>
    %6 = vector.shape_cast %5 : vector<16xf32> to vector<16x1xf32>
    %cst_2 = arith.constant 3.200000e+01 : f32
    %7 = vector.broadcast %cst_2 : f32 to vector<16x1xf32>
    %8 = arith.divf %6, %7 : vector<16x1xf32>
    %9 = vector.broadcast %8 : vector<16x1xf32> to vector<16x32xf32>
    %10 = arith.subf %0, %9 : vector<16x32xf32>
    %11 = arith.mulf %10, %10 : vector<16x32xf32>
    %cst_3 = arith.constant dense<0.000000e+00> : vector<16xf32>
    %12 = vector.multi_reduction <add>, %11, %cst_3 [1] : vector<16x32xf32> to vector<16xf32>
    %13 = vector.shape_cast %12 : vector<16xf32> to vector<16x1xf32>
    %cst_4 = arith.constant 0.0322580636 : f32
    %14 = vector.broadcast %cst_4 : f32 to vector<16x1xf32>
    %15 = arith.mulf %13, %14 : vector<16x1xf32>
    %cst_5 = arith.constant 9.99999997E-7 : f32
    %16 = vector.broadcast %cst_5 : f32 to vector<16x1xf32>
    %17 = arith.addf %15, %16 : vector<16x1xf32>
    %18 = math.rsqrt %17 : vector<16x1xf32>
    %19 = vector.broadcast %8 : vector<16x1xf32> to vector<16x32xf32>
    %20 = arith.subf %0, %19 : vector<16x32xf32>
    %21 = vector.broadcast %1 : f32 to vector<16x32xf32>
    %22 = arith.mulf %21, %20 : vector<16x32xf32>
    %23 = vector.broadcast %18 : vector<16x1xf32> to vector<16x32xf32>
    %24 = arith.mulf %22, %23 : vector<16x32xf32>
    %25 = vector.broadcast %2 : f32 to vector<16x32xf32>
    %26 = arith.addf %24, %25 : vector<16x32xf32>
    %27 = arith.truncf %26 : vector<16x32xf32> to vector<16x32xbf16>
    %c0_6 = arith.constant 0 : index
    %c0_7 = arith.constant 0 : index
    %28 = vector.load %arg2[%c0_6, %c0_7] : memref<32x96xbf16, #tpu.memory_space<vmem>>, vector<32x96xbf16>
    %cst_8 = arith.constant dense<0.000000e+00> : vector<16x96xf32>
    %29 = tpu.matmul %27, %28, %cst_8 {dimension_numbers = #tpu.dot_dimension_numbers<[1], [0], [0], [1], [0, 0, 1, 1], [], []>} : vector<16x32xbf16>, vector<32x96xbf16>, vector<16x96xf32> -> vector<16x96xf32>
    %c0_9 = arith.constant 0 : index
    %c0_10 = arith.constant 0 : index
    %30 = vector.load %arg3[%c0_9, %c0_10] : memref<1x96xf32, #tpu.memory_space<vmem>>, vector<1x96xf32>
    %31 = vector.broadcast %30 : vector<1x96xf32> to vector<16x96xf32>
    %32 = arith.addf %29, %31 : vector<16x96xf32>
    %33 = vector.extract_strided_slice %32 {offsets = [0, 0], sizes = [8, 96], strides = [1, 1]} : vector<16x96xf32> to vector<8x96xf32>
    %c0_11 = arith.constant 0 : index
    %34 = memref.load %arg1[%c0_11] : memref<2xi32, #tpu.memory_space<smem>>
    %35 = tpu.iota {dimensions = array<i32: 1>} : vector<8x8xi32>
    %36 = vector.broadcast %34 : i32 to vector<8x8xi32>
    %37 = arith.cmpi slt, %35, %36 : vector<8x8xi32>
    %cst_12 = arith.constant 0.000000e+00 : f32
    %38 = vector.broadcast %cst_12 : f32 to vector<8x32xf32>
    %39 = vector.extract_strided_slice %33 {offsets = [0, 0], sizes = [8, 8], strides = [1, 1]} : vector<8x96xf32> to vector<8x8xf32>
    %40 = vector.extract_strided_slice %33 {offsets = [0, 32], sizes = [8, 8], strides = [1, 1]} : vector<8x96xf32> to vector<8x8xf32>
    %41 = vector.extract_strided_slice %33 {offsets = [0, 64], sizes = [8, 8], strides = [1, 1]} : vector<8x96xf32> to vector<8x8xf32>
    %cst_13 = arith.constant dense<0.000000e+00> : vector<8x8xf32>
    %42 = tpu.matmul %39, %40, %cst_13 {dimension_numbers = #tpu.dot_dimension_numbers<[1], [1], [0], [0], [0, 0, 1, 0], [], []>} : vector<8x8xf32>, vector<8x8xf32>, vector<8x8xf32> -> vector<8x8xf32>
    %cst_14 = arith.constant -1.000000e+09 : f32
    %43 = vector.broadcast %cst_14 : f32 to vector<8x8xf32>
    %44 = arith.select %37, %42, %43 : vector<8x8xi1>, vector<8x8xf32>
    %cst_15 = arith.constant dense<0xFF800000> : vector<8xf32>
    %45 = vector.multi_reduction <maximumf>, %44, %cst_15 [1] : vector<8x8xf32> to vector<8xf32>
    %46 = vector.shape_cast %45 : vector<8xf32> to vector<8x1xf32>
    %47 = vector.broadcast %46 : vector<8x1xf32> to vector<8x8xf32>
    %48 = arith.subf %44, %47 : vector<8x8xf32>
    %49 = math.exp %48 : vector<8x8xf32>
    %cst_16 = arith.constant dense<0.000000e+00> : vector<8xf32>
    %50 = vector.multi_reduction <add>, %49, %cst_16 [1] : vector<8x8xf32> to vector<8xf32>
    %51 = vector.shape_cast %50 : vector<8xf32> to vector<8x1xf32>
    %52 = tpu.reciprocal %51 {approx = true} : vector<8x1xf32> -> vector<8x1xf32>
    %53 = vector.broadcast %52 : vector<8x1xf32> to vector<8x8xf32>
    %54 = arith.mulf %49, %53 : vector<8x8xf32>
    %cst_17 = arith.constant dense<0.000000e+00> : vector<8x8xf32>
    %55 = tpu.matmul %54, %41, %cst_17 {dimension_numbers = #tpu.dot_dimension_numbers<[1], [0], [0], [1], [0, 0, 1, 1], [], []>} : vector<8x8xf32>, vector<8x8xf32>, vector<8x8xf32> -> vector<8x8xf32>
    %56 = arith.truncf %55 : vector<8x8xf32> to vector<8x8xbf16>
    %c0_18 = arith.constant 0 : index
    %c0_19 = arith.constant 0 : index
    %57 = vector.load %arg4[%c0_18, %c0_19] : memref<32x32xbf16, #tpu.memory_space<vmem>>, vector<8x32xbf16>
    %cst_20 = arith.constant dense<0.000000e+00> : vector<8x32xf32>
    %58 = tpu.matmul %56, %57, %cst_20 {dimension_numbers = #tpu.dot_dimension_numbers<[1], [0], [0], [1], [0, 0, 1, 1], [], []>} : vector<8x8xbf16>, vector<8x32xbf16>, vector<8x32xf32> -> vector<8x32xf32>
    %59 = arith.addf %38, %58 : vector<8x32xf32>
    %60 = vector.extract_strided_slice %33 {offsets = [0, 8], sizes = [8, 8], strides = [1, 1]} : vector<8x96xf32> to vector<8x8xf32>
    %61 = vector.extract_strided_slice %33 {offsets = [0, 40], sizes = [8, 8], strides = [1, 1]} : vector<8x96xf32> to vector<8x8xf32>
    %62 = vector.extract_strided_slice %33 {offsets = [0, 72], sizes = [8, 8], strides = [1, 1]} : vector<8x96xf32> to vector<8x8xf32>
    %cst_21 = arith.constant dense<0.000000e+00> : vector<8x8xf32>
    %63 = tpu.matmul %60, %61, %cst_21 {dimension_numbers = #tpu.dot_dimension_numbers<[1], [1], [0], [0], [0, 0, 1, 0], [], []>} : vector<8x8xf32>, vector<8x8xf32>, vector<8x8xf32> -> vector<8x8xf32>
    %cst_22 = arith.constant -1.000000e+09 : f32
    %64 = vector.broadcast %cst_22 : f32 to vector<8x8xf32>
    %65 = arith.select %37, %63, %64 : vector<8x8xi1>, vector<8x8xf32>
    %cst_23 = arith.constant dense<0xFF800000> : vector<8xf32>
    %66 = vector.multi_reduction <maximumf>, %65, %cst_23 [1] : vector<8x8xf32> to vector<8xf32>
    %67 = vector.shape_cast %66 : vector<8xf32> to vector<8x1xf32>
    %68 = vector.broadcast %67 : vector<8x1xf32> to vector<8x8xf32>
    %69 = arith.subf %65, %68 : vector<8x8xf32>
    %70 = math.exp %69 : vector<8x8xf32>
    %cst_24 = arith.constant dense<0.000000e+00> : vector<8xf32>
    %71 = vector.multi_reduction <add>, %70, %cst_24 [1] : vector<8x8xf32> to vector<8xf32>
    %72 = vector.shape_cast %71 : vector<8xf32> to vector<8x1xf32>
    %73 = tpu.reciprocal %72 {approx = true} : vector<8x1xf32> -> vector<8x1xf32>
    %74 = vector.broadcast %73 : vector<8x1xf32> to vector<8x8xf32>
    %75 = arith.mulf %70, %74 : vector<8x8xf32>
    %cst_25 = arith.constant dense<0.000000e+00> : vector<8x8xf32>
    %76 = tpu.matmul %75, %62, %cst_25 {dimension_numbers = #tpu.dot_dimension_numbers<[1], [0], [0], [1], [0, 0, 1, 1], [], []>} : vector<8x8xf32>, vector<8x8xf32>, vector<8x8xf32> -> vector<8x8xf32>
    %77 = arith.truncf %76 : vector<8x8xf32> to vector<8x8xbf16>
    %c8 = arith.constant 8 : index
    %c0_26 = arith.constant 0 : index
    %78 = vector.load %arg4[%c8, %c0_26] : memref<32x32xbf16, #tpu.memory_space<vmem>>, vector<8x32xbf16>
    %cst_27 = arith.constant dense<0.000000e+00> : vector<8x32xf32>
    %79 = tpu.matmul %77, %78, %cst_27 {dimension_numbers = #tpu.dot_dimension_numbers<[1], [0], [0], [1], [0, 0, 1, 1], [], []>} : vector<8x8xbf16>, vector<8x32xbf16>, vector<8x32xf32> -> vector<8x32xf32>
    %80 = arith.addf %59, %79 : vector<8x32xf32>
    %81 = vector.extract_strided_slice %33 {offsets = [0, 16], sizes = [8, 8], strides = [1, 1]} : vector<8x96xf32> to vector<8x8xf32>
    %82 = vector.extract_strided_slice %33 {offsets = [0, 48], sizes = [8, 8], strides = [1, 1]} : vector<8x96xf32> to vector<8x8xf32>
    %83 = vector.extract_strided_slice %33 {offsets = [0, 80], sizes = [8, 8], strides = [1, 1]} : vector<8x96xf32> to vector<8x8xf32>
    %cst_28 = arith.constant dense<0.000000e+00> : vector<8x8xf32>
    %84 = tpu.matmul %81, %82, %cst_28 {dimension_numbers = #tpu.dot_dimension_numbers<[1], [1], [0], [0], [0, 0, 1, 0], [], []>} : vector<8x8xf32>, vector<8x8xf32>, vector<8x8xf32> -> vector<8x8xf32>
    %cst_29 = arith.constant -1.000000e+09 : f32
    %85 = vector.broadcast %cst_29 : f32 to vector<8x8xf32>
    %86 = arith.select %37, %84, %85 : vector<8x8xi1>, vector<8x8xf32>
    %cst_30 = arith.constant dense<0xFF800000> : vector<8xf32>
    %87 = vector.multi_reduction <maximumf>, %86, %cst_30 [1] : vector<8x8xf32> to vector<8xf32>
    %88 = vector.shape_cast %87 : vector<8xf32> to vector<8x1xf32>
    %89 = vector.broadcast %88 : vector<8x1xf32> to vector<8x8xf32>
    %90 = arith.subf %86, %89 : vector<8x8xf32>
    %91 = math.exp %90 : vector<8x8xf32>
    %cst_31 = arith.constant dense<0.000000e+00> : vector<8xf32>
    %92 = vector.multi_reduction <add>, %91, %cst_31 [1] : vector<8x8xf32> to vector<8xf32>
    %93 = vector.shape_cast %92 : vector<8xf32> to vector<8x1xf32>
    %94 = tpu.reciprocal %93 {approx = true} : vector<8x1xf32> -> vector<8x1xf32>
    %95 = vector.broadcast %94 : vector<8x1xf32> to vector<8x8xf32>
    %96 = arith.mulf %91, %95 : vector<8x8xf32>
    %cst_32 = arith.constant dense<0.000000e+00> : vector<8x8xf32>
    %97 = tpu.matmul %96, %83, %cst_32 {dimension_numbers = #tpu.dot_dimension_numbers<[1], [0], [0], [1], [0, 0, 1, 1], [], []>} : vector<8x8xf32>, vector<8x8xf32>, vector<8x8xf32> -> vector<8x8xf32>
    %98 = arith.truncf %97 : vector<8x8xf32> to vector<8x8xbf16>
    %c16 = arith.constant 16 : index
    %c0_33 = arith.constant 0 : index
    %99 = vector.load %arg4[%c16, %c0_33] : memref<32x32xbf16, #tpu.memory_space<vmem>>, vector<8x32xbf16>
    %cst_34 = arith.constant dense<0.000000e+00> : vector<8x32xf32>
    %100 = tpu.matmul %98, %99, %cst_34 {dimension_numbers = #tpu.dot_dimension_numbers<[1], [0], [0], [1], [0, 0, 1, 1], [], []>} : vector<8x8xbf16>, vector<8x32xbf16>, vector<8x32xf32> -> vector<8x32xf32>
    %101 = arith.addf %80, %100 : vector<8x32xf32>
    %102 = vector.extract_strided_slice %33 {offsets = [0, 24], sizes = [8, 8], strides = [1, 1]} : vector<8x96xf32> to vector<8x8xf32>
    %103 = vector.extract_strided_slice %33 {offsets = [0, 56], sizes = [8, 8], strides = [1, 1]} : vector<8x96xf32> to vector<8x8xf32>
    %104 = vector.extract_strided_slice %33 {offsets = [0, 88], sizes = [8, 8], strides = [1, 1]} : vector<8x96xf32> to vector<8x8xf32>
    %cst_35 = arith.constant dense<0.000000e+00> : vector<8x8xf32>
    %105 = tpu.matmul %102, %103, %cst_35 {dimension_numbers = #tpu.dot_dimension_numbers<[1], [1], [0], [0], [0, 0, 1, 0], [], []>} : vector<8x8xf32>, vector<8x8xf32>, vector<8x8xf32> -> vector<8x8xf32>
    %cst_36 = arith.constant -1.000000e+09 : f32
    %106 = vector.broadcast %cst_36 : f32 to vector<8x8xf32>
    %107 = arith.select %37, %105, %106 : vector<8x8xi1>, vector<8x8xf32>
    %cst_37 = arith.constant dense<0xFF800000> : vector<8xf32>
    %108 = vector.multi_reduction <maximumf>, %107, %cst_37 [1] : vector<8x8xf32> to vector<8xf32>
    %109 = vector.shape_cast %108 : vector<8xf32> to vector<8x1xf32>
    %110 = vector.broadcast %109 : vector<8x1xf32> to vector<8x8xf32>
    %111 = arith.subf %107, %110 : vector<8x8xf32>
    %112 = math.exp %111 : vector<8x8xf32>
    %cst_38 = arith.constant dense<0.000000e+00> : vector<8xf32>
    %113 = vector.multi_reduction <add>, %112, %cst_38 [1] : vector<8x8xf32> to vector<8xf32>
    %114 = vector.shape_cast %113 : vector<8xf32> to vector<8x1xf32>
    %115 = tpu.reciprocal %114 {approx = true} : vector<8x1xf32> -> vector<8x1xf32>
    %116 = vector.broadcast %115 : vector<8x1xf32> to vector<8x8xf32>
    %117 = arith.mulf %112, %116 : vector<8x8xf32>
    %cst_39 = arith.constant dense<0.000000e+00> : vector<8x8xf32>
    %118 = tpu.matmul %117, %104, %cst_39 {dimension_numbers = #tpu.dot_dimension_numbers<[1], [0], [0], [1], [0, 0, 1, 1], [], []>} : vector<8x8xf32>, vector<8x8xf32>, vector<8x8xf32> -> vector<8x8xf32>
    %119 = arith.truncf %118 : vector<8x8xf32> to vector<8x8xbf16>
    %c24 = arith.constant 24 : index
    %c0_40 = arith.constant 0 : index
    %120 = vector.load %arg4[%c24, %c0_40] : memref<32x32xbf16, #tpu.memory_space<vmem>>, vector<8x32xbf16>
    %cst_41 = arith.constant dense<0.000000e+00> : vector<8x32xf32>
    %121 = tpu.matmul %119, %120, %cst_41 {dimension_numbers = #tpu.dot_dimension_numbers<[1], [0], [0], [1], [0, 0, 1, 1], [], []>} : vector<8x8xbf16>, vector<8x32xbf16>, vector<8x32xf32> -> vector<8x32xf32>
    %122 = arith.addf %101, %121 : vector<8x32xf32>
    %c0_42 = arith.constant 0 : index
    %c0_43 = arith.constant 0 : index
    %123 = vector.load %arg12[%c0_42, %c0_43] : memref<16x32xf32, #tpu.memory_space<vmem>>, vector<8x32xf32>
    tpu.vector_store %arg12[%c0_42, %c0_43], %122 {strides = array<i32>} : memref<16x32xf32, #tpu.memory_space<vmem>>, vector<8x32xf32>,
    %124 = vector.extract_strided_slice %32 {offsets = [8, 0], sizes = [8, 96], strides = [1, 1]} : vector<16x96xf32> to vector<8x96xf32>
    %c1_44 = arith.constant 1 : index
    %125 = memref.load %arg1[%c1_44] : memref<2xi32, #tpu.memory_space<smem>>
    %126 = tpu.iota {dimensions = array<i32: 1>} : vector<8x8xi32>
    %127 = vector.broadcast %125 : i32 to vector<8x8xi32>
    %128 = arith.cmpi slt, %126, %127 : vector<8x8xi32>
    %cst_45 = arith.constant 0.000000e+00 : f32
    %129 = vector.broadcast %cst_45 : f32 to vector<8x32xf32>
    %130 = vector.extract_strided_slice %124 {offsets = [0, 0], sizes = [8, 8], strides = [1, 1]} : vector<8x96xf32> to vector<8x8xf32>
    %131 = vector.extract_strided_slice %124 {offsets = [0, 32], sizes = [8, 8], strides = [1, 1]} : vector<8x96xf32> to vector<8x8xf32>
    %132 = vector.extract_strided_slice %124 {offsets = [0, 64], sizes = [8, 8], strides = [1, 1]} : vector<8x96xf32> to vector<8x8xf32>
    %cst_46 = arith.constant dense<0.000000e+00> : vector<8x8xf32>
    %133 = tpu.matmul %130, %131, %cst_46 {dimension_numbers = #tpu.dot_dimension_numbers<[1], [1], [0], [0], [0, 0, 1, 0], [], []>} : vector<8x8xf32>, vector<8x8xf32>, vector<8x8xf32> -> vector<8x8xf32>
    %cst_47 = arith.constant -1.000000e+09 : f32
    %134 = vector.broadcast %cst_47 : f32 to vector<8x8xf32>
    %135 = arith.select %128, %133, %134 : vector<8x8xi1>, vector<8x8xf32>
    %cst_48 = arith.constant dense<0xFF800000> : vector<8xf32>
    %136 = vector.multi_reduction <maximumf>, %135, %cst_48 [1] : vector<8x8xf32> to vector<8xf32>
    %137 = vector.shape_cast %136 : vector<8xf32> to vector<8x1xf32>
    %138 = vector.broadcast %137 : vector<8x1xf32> to vector<8x8xf32>
    %139 = arith.subf %135, %138 : vector<8x8xf32>
    %140 = math.exp %139 : vector<8x8xf32>
    %cst_49 = arith.constant dense<0.000000e+00> : vector<8xf32>
    %141 = vector.multi_reduction <add>, %140, %cst_49 [1] : vector<8x8xf32> to vector<8xf32>
    %142 = vector.shape_cast %141 : vector<8xf32> to vector<8x1xf32>
    %143 = tpu.reciprocal %142 {approx = true} : vector<8x1xf32> -> vector<8x1xf32>
    %144 = vector.broadcast %143 : vector<8x1xf32> to vector<8x8xf32>
    %145 = arith.mulf %140, %144 : vector<8x8xf32>
    %cst_50 = arith.constant dense<0.000000e+00> : vector<8x8xf32>
    %146 = tpu.matmul %145, %132, %cst_50 {dimension_numbers = #tpu.dot_dimension_numbers<[1], [0], [0], [1], [0, 0, 1, 1], [], []>} : vector<8x8xf32>, vector<8x8xf32>, vector<8x8xf32> -> vector<8x8xf32>
    %147 = arith.truncf %146 : vector<8x8xf32> to vector<8x8xbf16>
    %c0_51 = arith.constant 0 : index
    %c0_52 = arith.constant 0 : index
    %148 = vector.load %arg4[%c0_51, %c0_52] : memref<32x32xbf16, #tpu.memory_space<vmem>>, vector<8x32xbf16>
    %cst_53 = arith.constant dense<0.000000e+00> : vector<8x32xf32>
    %149 = tpu.matmul %147, %148, %cst_53 {dimension_numbers = #tpu.dot_dimension_numbers<[1], [0], [0], [1], [0, 0, 1, 1], [], []>} : vector<8x8xbf16>, vector<8x32xbf16>, vector<8x32xf32> -> vector<8x32xf32>
    %150 = arith.addf %129, %149 : vector<8x32xf32>
    %151 = vector.extract_strided_slice %124 {offsets = [0, 8], sizes = [8, 8], strides = [1, 1]} : vector<8x96xf32> to vector<8x8xf32>
    %152 = vector.extract_strided_slice %124 {offsets = [0, 40], sizes = [8, 8], strides = [1, 1]} : vector<8x96xf32> to vector<8x8xf32>
    %153 = vector.extract_strided_slice %124 {offsets = [0, 72], sizes = [8, 8], strides = [1, 1]} : vector<8x96xf32> to vector<8x8xf32>
    %cst_54 = arith.constant dense<0.000000e+00> : vector<8x8xf32>
    %154 = tpu.matmul %151, %152, %cst_54 {dimension_numbers = #tpu.dot_dimension_numbers<[1], [1], [0], [0], [0, 0, 1, 0], [], []>} : vector<8x8xf32>, vector<8x8xf32>, vector<8x8xf32> -> vector<8x8xf32>
    %cst_55 = arith.constant -1.000000e+09 : f32
    %155 = vector.broadcast %cst_55 : f32 to vector<8x8xf32>
    %156 = arith.select %128, %154, %155 : vector<8x8xi1>, vector<8x8xf32>
    %cst_56 = arith.constant dense<0xFF800000> : vector<8xf32>
    %157 = vector.multi_reduction <maximumf>, %156, %cst_56 [1] : vector<8x8xf32> to vector<8xf32>
    %158 = vector.shape_cast %157 : vector<8xf32> to vector<8x1xf32>
    %159 = vector.broadcast %158 : vector<8x1xf32> to vector<8x8xf32>
    %160 = arith.subf %156, %159 : vector<8x8xf32>
    %161 = math.exp %160 : vector<8x8xf32>
    %cst_57 = arith.constant dense<0.000000e+00> : vector<8xf32>
    %162 = vector.multi_reduction <add>, %161, %cst_57 [1] : vector<8x8xf32> to vector<8xf32>
    %163 = vector.shape_cast %162 : vector<8xf32> to vector<8x1xf32>
    %164 = tpu.reciprocal %163 {approx = true} : vector<8x1xf32> -> vector<8x1xf32>
    %165 = vector.broadcast %164 : vector<8x1xf32> to vector<8x8xf32>
    %166 = arith.mulf %161, %165 : vector<8x8xf32>
    %cst_58 = arith.constant dense<0.000000e+00> : vector<8x8xf32>
    %167 = tpu.matmul %166, %153, %cst_58 {dimension_numbers = #tpu.dot_dimension_numbers<[1], [0], [0], [1], [0, 0, 1, 1], [], []>} : vector<8x8xf32>, vector<8x8xf32>, vector<8x8xf32> -> vector<8x8xf32>
    %168 = arith.truncf %167 : vector<8x8xf32> to vector<8x8xbf16>
    %c8_59 = arith.constant 8 : index
    %c0_60 = arith.constant 0 : index
    %169 = vector.load %arg4[%c8_59, %c0_60] : memref<32x32xbf16, #tpu.memory_space<vmem>>, vector<8x32xbf16>
    %cst_61 = arith.constant dense<0.000000e+00> : vector<8x32xf32>
    %170 = tpu.matmul %168, %169, %cst_61 {dimension_numbers = #tpu.dot_dimension_numbers<[1], [0], [0], [1], [0, 0, 1, 1], [], []>} : vector<8x8xbf16>, vector<8x32xbf16>, vector<8x32xf32> -> vector<8x32xf32>
    %171 = arith.addf %150, %170 : vector<8x32xf32>
    %172 = vector.extract_strided_slice %124 {offsets = [0, 16], sizes = [8, 8], strides = [1, 1]} : vector<8x96xf32> to vector<8x8xf32>
    %173 = vector.extract_strided_slice %124 {offsets = [0, 48], sizes = [8, 8], strides = [1, 1]} : vector<8x96xf32> to vector<8x8xf32>
    %174 = vector.extract_strided_slice %124 {offsets = [0, 80], sizes = [8, 8], strides = [1, 1]} : vector<8x96xf32> to vector<8x8xf32>
    %cst_62 = arith.constant dense<0.000000e+00> : vector<8x8xf32>
    %175 = tpu.matmul %172, %173, %cst_62 {dimension_numbers = #tpu.dot_dimension_numbers<[1], [1], [0], [0], [0, 0, 1, 0], [], []>} : vector<8x8xf32>, vector<8x8xf32>, vector<8x8xf32> -> vector<8x8xf32>
    %cst_63 = arith.constant -1.000000e+09 : f32
    %176 = vector.broadcast %cst_63 : f32 to vector<8x8xf32>
    %177 = arith.select %128, %175, %176 : vector<8x8xi1>, vector<8x8xf32>
    %cst_64 = arith.constant dense<0xFF800000> : vector<8xf32>
    %178 = vector.multi_reduction <maximumf>, %177, %cst_64 [1] : vector<8x8xf32> to vector<8xf32>
    %179 = vector.shape_cast %178 : vector<8xf32> to vector<8x1xf32>
    %180 = vector.broadcast %179 : vector<8x1xf32> to vector<8x8xf32>
    %181 = arith.subf %177, %180 : vector<8x8xf32>
    %182 = math.exp %181 : vector<8x8xf32>
    %cst_65 = arith.constant dense<0.000000e+00> : vector<8xf32>
    %183 = vector.multi_reduction <add>, %182, %cst_65 [1] : vector<8x8xf32> to vector<8xf32>
    %184 = vector.shape_cast %183 : vector<8xf32> to vector<8x1xf32>
    %185 = tpu.reciprocal %184 {approx = true} : vector<8x1xf32> -> vector<8x1xf32>
    %186 = vector.broadcast %185 : vector<8x1xf32> to vector<8x8xf32>
    %187 = arith.mulf %182, %186 : vector<8x8xf32>
    %cst_66 = arith.constant dense<0.000000e+00> : vector<8x8xf32>
    %188 = tpu.matmul %187, %174, %cst_66 {dimension_numbers = #tpu.dot_dimension_numbers<[1], [0], [0], [1], [0, 0, 1, 1], [], []>} : vector<8x8xf32>, vector<8x8xf32>, vector<8x8xf32> -> vector<8x8xf32>
    %189 = arith.truncf %188 : vector<8x8xf32> to vector<8x8xbf16>
    %c16_67 = arith.constant 16 : index
    %c0_68 = arith.constant 0 : index
    %190 = vector.load %arg4[%c16_67, %c0_68] : memref<32x32xbf16, #tpu.memory_space<vmem>>, vector<8x32xbf16>
    %cst_69 = arith.constant dense<0.000000e+00> : vector<8x32xf32>
    %191 = tpu.matmul %189, %190, %cst_69 {dimension_numbers = #tpu.dot_dimension_numbers<[1], [0], [0], [1], [0, 0, 1, 1], [], []>} : vector<8x8xbf16>, vector<8x32xbf16>, vector<8x32xf32> -> vector<8x32xf32>
    %192 = arith.addf %171, %191 : vector<8x32xf32>
    %193 = vector.extract_strided_slice %124 {offsets = [0, 24], sizes = [8, 8], strides = [1, 1]} : vector<8x96xf32> to vector<8x8xf32>
    %194 = vector.extract_strided_slice %124 {offsets = [0, 56], sizes = [8, 8], strides = [1, 1]} : vector<8x96xf32> to vector<8x8xf32>
    %195 = vector.extract_strided_slice %124 {offsets = [0, 88], sizes = [8, 8], strides = [1, 1]} : vector<8x96xf32> to vector<8x8xf32>
    %cst_70 = arith.constant dense<0.000000e+00> : vector<8x8xf32>
    %196 = tpu.matmul %193, %194, %cst_70 {dimension_numbers = #tpu.dot_dimension_numbers<[1], [1], [0], [0], [0, 0, 1, 0], [], []>} : vector<8x8xf32>, vector<8x8xf32>, vector<8x8xf32> -> vector<8x8xf32>
    %cst_71 = arith.constant -1.000000e+09 : f32
    %197 = vector.broadcast %cst_71 : f32 to vector<8x8xf32>
    %198 = arith.select %128, %196, %197 : vector<8x8xi1>, vector<8x8xf32>
    %cst_72 = arith.constant dense<0xFF800000> : vector<8xf32>
    %199 = vector.multi_reduction <maximumf>, %198, %cst_72 [1] : vector<8x8xf32> to vector<8xf32>
    %200 = vector.shape_cast %199 : vector<8xf32> to vector<8x1xf32>
    %201 = vector.broadcast %200 : vector<8x1xf32> to vector<8x8xf32>
    %202 = arith.subf %198, %201 : vector<8x8xf32>
    %203 = math.exp %202 : vector<8x8xf32>
    %cst_73 = arith.constant dense<0.000000e+00> : vector<8xf32>
    %204 = vector.multi_reduction <add>, %203, %cst_73 [1] : vector<8x8xf32> to vector<8xf32>
    %205 = vector.shape_cast %204 : vector<8xf32> to vector<8x1xf32>
    %206 = tpu.reciprocal %205 {approx = true} : vector<8x1xf32> -> vector<8x1xf32>
    %207 = vector.broadcast %206 : vector<8x1xf32> to vector<8x8xf32>
    %208 = arith.mulf %203, %207 : vector<8x8xf32>
    %cst_74 = arith.constant dense<0.000000e+00> : vector<8x8xf32>
    %209 = tpu.matmul %208, %195, %cst_74 {dimension_numbers = #tpu.dot_dimension_numbers<[1], [0], [0], [1], [0, 0, 1, 1], [], []>} : vector<8x8xf32>, vector<8x8xf32>, vector<8x8xf32> -> vector<8x8xf32>
    %210 = arith.truncf %209 : vector<8x8xf32> to vector<8x8xbf16>
    %c24_75 = arith.constant 24 : index
    %c0_76 = arith.constant 0 : index
    %211 = vector.load %arg4[%c24_75, %c0_76] : memref<32x32xbf16, #tpu.memory_space<vmem>>, vector<8x32xbf16>
    %cst_77 = arith.constant dense<0.000000e+00> : vector<8x32xf32>
    %212 = tpu.matmul %210, %211, %cst_77 {dimension_numbers = #tpu.dot_dimension_numbers<[1], [0], [0], [1], [0, 0, 1, 1], [], []>} : vector<8x8xbf16>, vector<8x32xbf16>, vector<8x32xf32> -> vector<8x32xf32>
    %213 = arith.addf %192, %212 : vector<8x32xf32>
    %c8_78 = arith.constant 8 : index
    %c0_79 = arith.constant 0 : index
    %214 = vector.load %arg12[%c8_78, %c0_79] : memref<16x32xf32, #tpu.memory_space<vmem>>, vector<8x32xf32>
    tpu.vector_store %arg12[%c8_78, %c0_79], %213 {strides = array<i32>} : memref<16x32xf32, #tpu.memory_space<vmem>>, vector<8x32xf32>,
    %c0_80 = arith.constant 0 : index
    %c0_81 = arith.constant 0 : index
    %215 = vector.load %arg12[%c0_80, %c0_81] : memref<16x32xf32, #tpu.memory_space<vmem>>, vector<16x32xf32>
    %216 = arith.addf %0, %215 : vector<16x32xf32>
    %c0_82 = arith.constant 0 : index
    %c0_83 = arith.constant 0 : index
    %217 = vector.load %arg5[%c0_82, %c0_83] : memref<1x32xf32, #tpu.memory_space<vmem>>, vector<1x32xf32>
    %218 = vector.broadcast %217 : vector<1x32xf32> to vector<16x32xf32>
    %219 = arith.addf %216, %218 : vector<16x32xf32>
    %cst_84 = arith.constant dense<0.000000e+00> : vector<16xf32>
    %220 = vector.multi_reduction <add>, %219, %cst_84 [1] : vector<16x32xf32> to vector<16xf32>
    %221 = vector.shape_cast %220 : vector<16xf32> to vector<16x1xf32>
    %cst_85 = arith.constant 3.200000e+01 : f32
    %222 = vector.broadcast %cst_85 : f32 to vector<16x1xf32>
    %223 = arith.divf %221, %222 : vector<16x1xf32>
    %224 = vector.broadcast %223 : vector<16x1xf32> to vector<16x32xf32>
    %225 = arith.subf %219, %224 : vector<16x32xf32>
    %226 = arith.mulf %225, %225 : vector<16x32xf32>
    %cst_86 = arith.constant dense<0.000000e+00> : vector<16xf32>
    %227 = vector.multi_reduction <add>, %226, %cst_86 [1] : vector<16x32xf32> to vector<16xf32>
    %228 = vector.shape_cast %227 : vector<16xf32> to vector<16x1xf32>
    %cst_87 = arith.constant 0.0322580636 : f32
    %229 = vector.broadcast %cst_87 : f32 to vector<16x1xf32>
    %230 = arith.mulf %228, %229 : vector<16x1xf32>
    %cst_88 = arith.constant 9.99999997E-7 : f32
    %231 = vector.broadcast %cst_88 : f32 to vector<16x1xf32>
    %232 = arith.addf %230, %231 : vector<16x1xf32>
    %233 = math.rsqrt %232 : vector<16x1xf32>
    %234 = vector.broadcast %223 : vector<16x1xf32> to vector<16x32xf32>
    %235 = arith.subf %219, %234 : vector<16x32xf32>
    %236 = vector.broadcast %3 : f32 to vector<16x32xf32>
    %237 = arith.mulf %236, %235 : vector<16x32xf32>
    %238 = vector.broadcast %233 : vector<16x1xf32> to vector<16x32xf32>
    %239 = arith.mulf %237, %238 : vector<16x32xf32>
    %240 = vector.broadcast %4 : f32 to vector<16x32xf32>
    %241 = arith.addf %239, %240 : vector<16x32xf32>
    %242 = arith.truncf %241 : vector<16x32xf32> to vector<16x32xbf16>
    %c0_89 = arith.constant 0 : index
    %c0_90 = arith.constant 0 : index
    %243 = vector.load %arg6[%c0_89, %c0_90] : memref<32x64xbf16, #tpu.memory_space<vmem>>, vector<32x64xbf16>
    %cst_91 = arith.constant dense<0.000000e+00> : vector<16x64xf32>
    %244 = tpu.matmul %242, %243, %cst_91 {dimension_numbers = #tpu.dot_dimension_numbers<[1], [0], [0], [1], [0, 0, 1, 1], [], []>} : vector<16x32xbf16>, vector<32x64xbf16>, vector<16x64xf32> -> vector<16x64xf32>
    %c0_92 = arith.constant 0 : index
    %c0_93 = arith.constant 0 : index
    %245 = vector.load %arg7[%c0_92, %c0_93] : memref<1x64xf32, #tpu.memory_space<vmem>>, vector<1x64xf32>
    %246 = vector.broadcast %245 : vector<1x64xf32> to vector<16x64xf32>
    %247 = arith.addf %244, %246 : vector<16x64xf32>
    %cst_94 = arith.constant 0.000000e+00 : f32
    %248 = vector.broadcast %cst_94 : f32 to vector<16x64xf32>
    %249 = arith.maximumf %247, %248 : vector<16x64xf32>
    %250 = arith.truncf %249 : vector<16x64xf32> to vector<16x64xbf16>
    %c0_95 = arith.constant 0 : index
    %c0_96 = arith.constant 0 : index
    %251 = vector.load %arg8[%c0_95, %c0_96] : memref<64x32xbf16, #tpu.memory_space<vmem>>, vector<64x32xbf16>
    %cst_97 = arith.constant dense<0.000000e+00> : vector<16x32xf32>
    %252 = tpu.matmul %250, %251, %cst_97 {dimension_numbers = #tpu.dot_dimension_numbers<[1], [0], [0], [1], [0, 0, 1, 1], [], []>} : vector<16x64xbf16>, vector<64x32xbf16>, vector<16x32xf32> -> vector<16x32xf32>
    %c0_98 = arith.constant 0 : index
    %c0_99 = arith.constant 0 : index
    %253 = vector.load %arg9[%c0_98, %c0_99] : memref<1x32xf32, #tpu.memory_space<vmem>>, vector<1x32xf32>
    %254 = vector.broadcast %253 : vector<1x32xf32> to vector<16x32xf32>
    %255 = arith.addf %252, %254 : vector<16x32xf32>
    %256 = arith.addf %219, %255 : vector<16x32xf32>
    %c0_100 = arith.constant 0 : index
    %c0_101 = arith.constant 0 : index
    %257 = vector.load %arg11[%c0_100, %c0_101] : memref<16x32xf32, #tpu.memory_space<vmem>>, vector<16x32xf32>
    tpu.vector_store %arg11[%c0_100, %c0_101], %256 {strides = array<i32>} : memref<16x32xf32, #tpu.memory_space<vmem>>, vector<16x32xf32>,
    return
  }
}

</mosaic_0001>

<bundles_post_ra>
// kernel: fwd.1
= control target key start
LH: loop header
LB: loop body
LE: loop exit
PB: predicated region body
PF: predicated region fallthrough
CT: control target
= control target key end

     0   :  { %16 = vsyncpa [#allocation6], 0  ;;  %s3082_s0 = inlined_call_operand.vmem [shape: f32[16,32], index: 0, kind: input, shape index: {}]   ;;  %s3083_s1 = inlined_call_operand.vmem [shape: s32[2], index: 1, kind: input, shape index: {}]   ;;  %s3084_s2 = inlined_call_operand.hbm [shape: bf16[32,96], index: 2, kind: input, shape index: {}]   ;;  %s3085_s3 = inlined_call_operand.vmem [shape: f32[1,96], index: 3, kind: input, shape index: {}]   ;;  %s3086_s4 = inlined_call_operand.hbm [shape: bf16[32,32], index: 4, kind: input, shape index: {}]   ;;  %s3087_s5 = inlined_call_operand.vmem [shape: f32[1,32], index: 5, kind: input, shape index: {}]   ;;  %s3088_s6 = inlined_call_operand.hbm [shape: bf16[32,64], index: 6, kind: input, shape index: {}]   ;;  %s3089_s7 = inlined_call_operand.vmem [shape: f32[1,64], index: 7, kind: input, shape index: {}]   ;;  %s3090_s8 = inlined_call_operand.vmem [shape: bf16[64,32], index: 8, kind: input, shape index: {}]   ;;  %s3091_s9 = inlined_call_operand.vmem [shape: f32[1,32], index: 9, kind: input, shape index: {}]   ;;  %s3092_s10 = inlined_call_operand.vmem [shape: f32[4], index: 10, kind: input, shape index: {}]   ;;  %s3093_s11 = inlined_call_operand.hbm [shape: f32[16,32], index: 11, kind: output, shape index: {}]  }
   0x1   :  { %17 = vsyncpa [#allocation4], 0 }
   0x2   :  { %18 = vsyncpa [#allocation9], 0 }
   0x3   :  { %19 = vsyncpa [#allocation12], 0 }
   0x4   :  { %20 = vsyncpa [#allocation5], 0  ;;  %s29_s19 = sshll.u32 %s3083_s1, 4  ;;  %s2646_s20 = smov [#allocation8]   ;;  %s30_s19 = int_to_ptr.vmem [resolvable:$true] %s29_s19 }
   0x5   :  { %s52_s21 = sshll.u32 %s2646_s20, 4  ;;  %s2524_s24 = scalar_lea.hbm %s3086_s4, 256  ;;  %s53_s21 = int_to_ptr.vmem [resolvable:$true] %s52_s21 }
   0x6   :  { %p2525_p0 = scmp.ne.s32.totalorder %s3086_s4, %s2524_s24  ;;  %p2528_p1 = scmp.lt.u32.totalorder %s2524_s24, %s3086_s4 }
   0x8   :  { %p2530_p2 = pnand %p2528_p1, %p2525_p0 }
   0xa   :  { %2533 = shalt.err (!%p2530_p2)
}
   0xb   :  { %s2534_s29 = scalar_lea.vmem %s53_s21, 256  ;;  %p2539_p4 = scmp.lt.s32.totalorder %s53_s21, %s53_s21 }
   0xc   :  { %p2535_p3 = scmp.ne.s32.totalorder %s53_s21, %s2534_s29  ;;  %p2540_p5 = scmp.lt.s32.totalorder %s2534_s29, %s2534_s29 }
   0xe   :  { %p2541_p6 = por %p2540_p5, %p2539_p4 }
  0x10   :  { %p2542_p7 = pnand %p2541_p6, %p2535_p3 }
  0x12   :  { %2545 = shalt.err (!%p2542_p7)
}
  0x13   :  { %s2647_s1 = smov 64   ;;  %s2648_s30 = smov 4  }
  0x14   :  { %58 = dma.hbm_to_vmem [thread:$0]  %s3086_s4, 256, %s53_s21, [#allocation9], %s2647_s1, %s2647_s1, %s2648_s30  }
  0x15   :  { %s2546_s14 = scalar_lea.vmem %s30_s19, 16  ;;  %p2551_p9 = scmp.lt.s32.totalorder %s30_s19, %s30_s19 }
  0x16   :  { %p2547_p8 = scmp.ne.s32.totalorder %s30_s19, %s2546_s14  ;;  %p2552_p10 = scmp.lt.s32.totalorder %s2546_s14, %s2546_s14 }
  0x18   :  { %p2553_p11 = por %p2552_p10, %p2551_p9 }
  0x1a   :  { %p2554_p12 = pnand %p2553_p11, %p2547_p8 }
  0x1c   :  { %2557 = shalt.err (!%p2554_p12)
}
  0x1d   :  { %s2649_s15 = smov [#allocation3]   ;;  %s2650_s16 = smov [#allocation7]  }
  0x1e   :  { %32 = dma.vmem_to_smem %s30_s19, 16, %s2649_s15, [#allocation6]  }
  0x1f   :  { %s38_s17 = sshll.u32 %s2650_s16, 4  ;;  %s2651_s18 = smov [#allocation10]   ;;  %s39_s17 = int_to_ptr.vmem [resolvable:$true] %s38_s17 }
  0x20   :  { %s66_s20 = sshll.u32 %s2651_s18, 4  ;;  %s2558_s4 = scalar_lea.hbm %s3084_s2, 256  ;;  %s2746_s20 = int_to_ptr.vmem [resolvable:$true] %s66_s20 }
  0x21   :  { %p2559_p13 = scmp.ne.s32.totalorder %s3084_s2, %s2558_s4  ;;  %p2562_p0 = scmp.lt.u32.totalorder %s2558_s4, %s3084_s2 }
  0x23   :  { %p2564_p1 = pnand %p2562_p0, %p2559_p13 }
  0x25   :  { %2567 = shalt.err (!%p2564_p1)
}
  0x26   :  { %s2568_s19 = scalar_lea.vmem %s39_s17, 256  ;;  %p2573_p3 = scmp.lt.s32.totalorder %s39_s17, %s39_s17 }
  0x27   :  { %p2569_p2 = scmp.ne.s32.totalorder %s39_s17, %s2568_s19  ;;  %p2574_p4 = scmp.lt.s32.totalorder %s2568_s19, %s2568_s19 }
  0x29   :  { %p2575_p5 = por %p2574_p4, %p2573_p3 }
  0x2b   :  { %p2576_p6 = pnand %p2575_p5, %p2569_p2 }
  0x2d   :  { %2579 = shalt.err (!%p2576_p6)
}
  0x2e   :  { %44 = dma.hbm_to_vmem [thread:$0]  %s3084_s2, 256, %s39_s17, [#allocation4], %s2647_s1, %s2647_s1, %s2648_s30  }
  0x2f   :  { %s2580_s13 = scalar_lea.hbm %s3088_s6, 256 }
  0x30   :  { %p2581_p7 = scmp.ne.s32.totalorder %s3088_s6, %s2580_s13  ;;  %p2584_p8 = scmp.lt.u32.totalorder %s2580_s13, %s3088_s6 }
  0x32   :  { %p2586_p9 = pnand %p2584_p8, %p2581_p7 }
  0x34   :  { %2589 = shalt.err (!%p2586_p9)
}
  0x35   :  { %s2590_s22 = scalar_lea.vmem %s2746_s20, 256  ;;  %p2595_p11 = scmp.lt.s32.totalorder %s2746_s20, %s2746_s20 }
  0x36   :  { %p2591_p10 = scmp.ne.s32.totalorder %s2746_s20, %s2590_s22  ;;  %p2596_p12 = scmp.lt.s32.totalorder %s2590_s22, %s2590_s22 }
  0x38   :  { %p2597_p13 = por %p2596_p12, %p2595_p11 }
  0x3a   :  { %p2598_p0 = pnand %p2597_p13, %p2591_p10 }
  0x3c   :  { %2601 = shalt.err (!%p2598_p0)
}
  0x3d   :  { %72 = dma.hbm_to_vmem [thread:$0]  %s3088_s6, 256, %s2746_s20, [#allocation9], %s2647_s1, %s2647_s1, %s2648_s30  }
  0x3e   :  { %s85_s21 = sshll.u32 %s3092_s10, 4  ;;  %s86_s21 = int_to_ptr.vmem [resolvable:$true] %s85_s21 }
  0x3f   :  { %s2602_s24 = scalar_lea.vmem %s86_s21, 16  ;;  %p2607_p2 = scmp.lt.s32.totalorder %s86_s21, %s86_s21 }
  0x40   :  { %p2603_p1 = scmp.ne.s32.totalorder %s86_s21, %s2602_s24  ;;  %p2608_p3 = scmp.lt.s32.totalorder %s2602_s24, %s2602_s24 }
  0x42   :  { %p2609_p4 = por %p2608_p3, %p2607_p2 }
  0x44   :  { %p2610_p5 = pnand %p2609_p4, %p2603_p1 }
  0x46   :  { %2613 = shalt.err (!%p2610_p5)
}
  0x47   :  { %s2652_s25 = smov [#allocation11]  }
  0x48   :  { %88 = dma.vmem_to_smem %s86_s21, 16, %s2652_s25, [#allocation12]  }
  0x49   :  { %2636 = dma.done.wait [#allocation6], 16  }
  0x4a   :  { %2637 = vsyncadd [#allocation6], 4294967280 }
  0x4b   :  { %2638 = dma.done.wait [#allocation4], 256  }
  0x4c   :  { %2639 = vsyncadd [#allocation4], 4294967040 }
  0x4d   :  { %2640 = dma.done.wait [#allocation9], 512  }
  0x4e   :  { %2641 = vsyncadd [#allocation9], 4294966784 }
  0x4f   :  { %2642 = dma.done.wait [#allocation12], 16  }
  0x50   :  { %2643 = vsyncadd [#allocation12], 4294967280 }
  0x51   :  { %104 = sfence }
  0x52   :  { %v2789_v0 = vld [vmem:[%s3082_s0] sm:$0xff]  ;;  %vm112_vm0 = vcmask 261120   ;;  %v2794_v1 = vld [vmem:[%s3082_s0 + $0x8] sm:$0xff]  ;;  %v2476_v14 = vld [vmem:[#allocation7] sm:$0xff]   ;;  %v2653_v15 = vmov 0.0   ;;  %vm2654_vm1 = vmmov 0   ;;  %v215_v42 = vlaneseq }
  0x53   :  { %v113_v2 = vsel %vm112_vm0, %v2789_v0, 0.0  ;;  %v116_v3 = vsel %vm112_vm0, %v2794_v1, 0.0  ;;  %2274 = vmatprep.subr.bf16.mxu0 %v2653_v15  ;;  %2278 = vmatprep.mubr.msk.bf16.mxu0 %vm2654_vm1, %v2653_v15  ;;  %v2477_v16 = vld [vmem:[#allocation7 + $0x8] sm:$0xff]   ;;  %s108_s0 = sld [smem:[#allocation11]]  ;;  %s2164_s26 = sld [smem:[#allocation11 + $0x1]]  ;;  %vm222_vm2 = vcmask 64512  }
  0x54   :  { %114 = vadd.xlane.f32.xlu0 %v113_v2  ;;  %2275 = vmatpush3.bf16.msra.mxu0 %v2476_v14  ;;  %v2167_v34 = vld [vmem:[%s3085_s3] ss:$0 sm:$0xff]  ;;  %s2655_s28 = smov 96   ;;  %s2656_s29 = smov 88   ;;  %v2832_v43 = vand.u32 127, %v215_v42  ;;  %vm558_vm4 = vcmask 1043456  }
  0x55   :  { %2282 = vmatprep.subr.mxu1 %v2653_v15  ;;  %2276 = vmatprep.subr.bf16.mxu0 %v2653_v15  ;;  %s214_s3 = sld [smem:[#allocation3]]  ;;  %s2657_s12 = smov 120   ;;  %v815_v42 = vld [vmem:[#allocation8 + $0x8] sm:$0xf]  ;;  %vm2095_vm6 = vcmask 523264  }
  0x56   :  { %2284 = vmatprep.mubr.msk.f32.mxu1 %vm2654_vm1, %v2653_v15  ;;  %s2658_s13 = smov 56   ;;  %s2659_s14 = smov 112  }
  0x57   :  { %s2660_s15 = smov 80   ;;  %s2661_s16 = smov 72  }
  0x58   :  { %117 = vadd.xlane.f32.xlu0 %v116_v3  ;;  %2277 = vmatpush3.bf16.msra.mxu0 %v2477_v16  ;;  %s2662_s18 = smov 104   ;;  %s2663_s22 = smov 48  }
  0x59   :  { %2297 = vmatprep.subr.mxu0 %v2653_v15  ;;  %v138_v23 = vstv %s108_s0  ;;  %v143_v29 = vstv %s2164_s26  ;;  %s2664_s2 = smov 40   ;;  %s2187_s17 = sld [smem:[#allocation3 + $0x1]] }
  0x5a   :  { %s2165_s25 = sld [smem:[#allocation11 + $0x2]]  ;;  %s2166_s6 = sld [smem:[#allocation11 + $0x3]] }
  0x5b   :  { %v217_v44 = vstv %s214_s3 }
  0x5c   :  { %vm2835_vm3 = vcmp.lt.s32.totalorder %v2832_v43, %v217_v44  ;;  %v820_v44 = vsel %vm558_vm4, %v815_v42, 0 }
  0xe1   :  { %v115_v4 = vpop.xlane.xlu0 %114 }
  0xe2   :  { %v120_v5 = vmul.f32 0.03125, %v115_v4 }
  0xe4   :  { %v122_v6 = vsub.f32 %v2789_v0, %v120_v5 }
  0xe5   :  { %v118_v7 = vpop.xlane.xlu0 %117 }
  0xe6   :  { %v121_v8 = vmul.f32 0.03125, %v118_v7  ;;  %v124_v9 = vmul.f32 %v122_v6, %v122_v6  ;;  %v139_v25 = vmul.f32 %v138_v23, %v122_v6 }
  0xe8   :  { %v123_v10 = vsub.f32 %v2794_v1, %v121_v8  ;;  %v126_v11 = vsel %vm112_vm0, %v124_v9, 0.0 }
  0xe9   :  { %127 = vadd.xlane.f32.xlu1 %v126_v11 }
  0xea   :  { %v125_v12 = vmul.f32 %v123_v10, %v123_v10  ;;  %v140_v26 = vmul.f32 %v138_v23, %v123_v10 }
  0xec   :  { %v129_v13 = vsel %vm112_vm0, %v125_v12, 0.0 }
  0xed   :  { %130 = vadd.xlane.f32.xlu1 %v129_v13 }
 0x176   :  { %v128_v17 = vpop.xlane.xlu1 %127 }
 0x177   :  { %v132_v18 = vmul.f32 0.032258064, %v128_v17  ;;  %v554_v17 = vld [vmem:[#allocation8 + $0x4] sm:$0xf] }
 0x179   :  { %v134_v19 = vadd.f32 1e-06, %v132_v18  ;;  %v560_v18 = vsel %vm558_vm4, %v554_v17, 0 }
 0x17a   :  { %v131_v20 = vpop.xlane.xlu1 %130 }
 0x17b   :  { %2484 = vrsqrt.f32 %v134_v19  ;;  %v133_v21 = vmul.f32 0.032258064, %v131_v20  ;;  %v386_v19 = vld [vmem:[#allocation8] sm:$0xf] }
 0x17c   :  { %v606_v23 = vsel %vm558_vm4, %v386_v19, 0 }
 0x17d   :  { %v135_v22 = vadd.f32 1e-06, %v133_v21 }
 0x17f   :  { %2486 = vrsqrt.f32 %v135_v22 }
 0x185   :  { %v2485_v24 = vpop.eup %2484 }
 0x186   :  { %v141_v27 = vmul.f32 %v2485_v24, %v139_v25 }
 0x188   :  { %v144_v31 = vadd.f32 %v143_v29, %v141_v27 }
 0x189   :  { %v2487_v28 = vpop.eup %2486 }
 0x18a   :  { %v142_v30 = vmul.f32 %v2487_v28, %v140_v26 }
 0x18c   :  { %v145_v32 = vadd.f32 %v143_v29, %v142_v30 }
 0x18e   :  { %v146_v33 = vpack.c.bf16 %v145_v32, %v144_v31 }
 0x190   :  { %2279 = vmatmul.mubr.msk.bf16.vlgmr.msra.gmra.mrb[0].mxu0 %vm112_vm0, %v146_v33 }
 0x191   :  { %2299 = vmatprep.mubr.msk.f32.mxu0 %vm2654_vm1, %v2653_v15 }
 0x263   :  { %v207_v35 = vpop.f32.mrb[0].mxu0 }
 0x264   :  { %v2818_v36 = vadd.f32 %v2167_v34, %v207_v35  ;;  %v2280_v37 = vpop.f32.mrb[1].mxu0 }
 0x265   :  { %v210_v38 = vpop.f32.mrb[2].mxu0 }
 0x266   :  { %v2820_v39 = vadd.f32 %v2167_v34, %v210_v38  ;;  %220 = vrot.lane.b32.xlu0 %v2818_v36, %s2655_s28  ;;  %v2281_v40 = vpop.f32.mrb[3].mxu0 }
 0x26a   :  { %389 = vrot.lane.b32.xlu0 %v2818_v36, %s2656_s29 }
 0x2d8   :  { %v221_v41 = vpop.permute.xlu0 %220 }
 0x2d9   :  { %2283 = vmatpush3.xpose.msk.msra.mxu1 %vm222_vm2, %v221_v41 }
 0x2da   :  { %2287 = vmatprep.subr.mxu1 %v2653_v15 }
 0x2dc   :  { %2285 = vmatmul.mubr.msk.f32.vlgmr.msra.gmra.mrb[0].mxu1 %vm222_vm2, %v2818_v36  ;;  %v390_v59 = vpop.permute.xlu0 %389 }
 0x2dd   :  { %2289 = vmatprep.mubr.msk.f32.mxu1 %vm2654_vm1, %v2653_v15 }
 0x3af   :  { %v293_v46 = vpop.f32.mrb[0].mxu1 }
 0x3b0   :  { %v297_v47 = vsel %vm2835_vm3, %v293_v46, -1e+09  ;;  %v2286_v48 = vpop.f32.mrb[1].mxu1 }
 0x3b1   :  { %v298_v49 = vsel %vm222_vm2, %v297_v47, -inf }
 0x3b2   :  { %299 = vmax.xlane.f32.xlu1 %v298_v49 }
 0x3c3   :  { %309 = vrot.lane.b32.xlu1 %v2818_v36, %s2647_s1 }
 0x43f   :  { %v300_v50 = vpop.xlane.xlu1 %299 }
 0x440   :  { %v301_v51 = vsub.f32 %v297_v47, %v300_v50 }
 0x442   :  { %v302_v52 = vmul.f32 1.442695, %v301_v51 }
 0x443   :  { %v310_v53 = vpop.permute.xlu1 %309 }
 0x444   :  { %2488 = vpow2.f32 %v302_v52  ;;  %2288 = vmatpush3.msra.mxu1 %v310_v53 }
 0x445   :  { %2292 = vmatprep.subr.mxu1 %v2653_v15 }
 0x44e   :  { %v2489_v54 = vpop.eup %2488 }
 0x44f   :  { %v304_v55 = vsel %vm222_vm2, %v2489_v54, 0.0 }
 0x450   :  { %305 = vadd.xlane.f32.xlu1 %v304_v55 }
 0x461   :  { %387 = vrot.lane.b32.xlu1 %v2818_v36, %s2657_s12 }
 0x4dd   :  { %v306_v56 = vpop.xlane.xlu1 %305 }
 0x4de   :  { %2490 = vrcp.f32 %v306_v56 }
 0x4e1   :  { %v388_v60 = vpop.permute.xlu1 %387 }
 0x4e8   :  { %v2491_v57 = vpop.eup %2490 }
 0x4e9   :  { %v308_v58 = vmul.f32 %v2491_v57, %v2489_v54 }
 0x4eb   :  { %2290 = vmatmul.mubr.msk.f32.vlgmr.msra.gmra.mrb[2].mxu1 %vm222_vm2, %v308_v58 }
 0x4ec   :  { %2293 = vmatpush3.xpose.msk.msra.mxu1 %vm222_vm2, %v390_v59  ;;  %2294 = vmatprep.mubr.msk.f32.mxu1 %vm2654_vm1, %v2653_v15 }
 0x4ed   :  { %2302 = vmatprep.subr.bf16.mxu1 %v2653_v15 }
 0x4ef   :  { %2295 = vmatmul.mubr.msk.f32.vlgmr.msra.gmra.mrb[4].mxu1 %vm222_vm2, %v388_v60 }
 0x4f0   :  { %2304 = vmatprep.mubr.msk.bf16.mxu1 %vm2654_vm1, %v2653_v15  ;;  %2303 = vmatpush3.bf16.msra.mxu1 %v560_v18 }
 0x4f1   :  { %2308 = vmatprep.subr.bf16.mxu1 %v2653_v15 }
 0x5be   :  { %v381_v61 = vpop.f32.mrb[2].mxu1 }
 0x5bf   :  { %v2291_v62 = vpop.f32.mrb[3].mxu1  ;;  %v385_v28 = vpack.c.bf16 %v381_v61, %v381_v61  ;;  %v1030_v61 = vld [vmem:[#allocation8 + $0xc] sm:$0xf] }
 0x5c0   :  { %v1035_v62 = vsel %vm558_vm4, %v1030_v61, 0 }
 0x5c2   :  { %v461_v63 = vpop.f32.mrb[4].mxu1 }
 0x5c3   :  { %v465_v2 = vsel %vm2835_vm3, %v461_v63, -1e+09  ;;  %v2296_v3 = vpop.f32.mrb[5].mxu1  ;;  %v1080_v63 = vstv %s2187_s17 }
 0x5c4   :  { %v466_v4 = vsel %vm222_vm2, %v465_v2, -inf  ;;  %vm2930_vm5 = vcmp.lt.s32.totalorder %v2832_v43, %v1080_v63 }
 0x5c5   :  { %467 = vmax.xlane.f32.xlu0 %v466_v4 }
 0x5db   :  { %477 = vrot.lane.b32.xlu0 %v2818_v36, %s2658_s13 }
 0x5df   :  { %648 = vrot.lane.b32.xlu0 %v2818_v36, %s2659_s14 }
 0x652   :  { %v468_v5 = vpop.xlane.xlu0 %467 }
 0x653   :  { %v469_v6 = vsub.f32 %v465_v2, %v468_v5  ;;  %v1891_v5 = vld [vmem:[#allocation8 + $0xc] sm:$0xf] }
 0x655   :  { %v470_v7 = vmul.f32 1.442695, %v469_v6 }
 0x656   :  { %v478_v8 = vpop.permute.xlu0 %477 }
 0x657   :  { %2492 = vpow2.f32 %v470_v7  ;;  %2298 = vmatpush3.msra.mxu0 %v478_v8 }
 0x658   :  { %2314 = vmatprep.subr.mxu0 %v2653_v15 }
 0x65a   :  { %v649_v16 = vpop.permute.xlu0 %648 }
 0x661   :  { %v2493_v9 = vpop.eup %2492 }
 0x662   :  { %v472_v10 = vsel %vm222_vm2, %v2493_v9, 0.0 }
 0x663   :  { %473 = vadd.xlane.f32.xlu1 %v472_v10 }
 0x674   :  { %650 = vrot.lane.b32.xlu1 %v2818_v36, %s2660_s15 }
 0x6f0   :  { %v474_v11 = vpop.xlane.xlu1 %473 }
 0x6f1   :  { %2494 = vrcp.f32 %v474_v11 }
 0x6f4   :  { %v651_v14 = vpop.permute.xlu1 %650 }
 0x6fb   :  { %v2495_v12 = vpop.eup %2494 }
 0x6fc   :  { %v476_v13 = vmul.f32 %v2495_v12, %v2493_v9 }
 0x6fe   :  { %2300 = vmatmul.mubr.msk.f32.vlgmr.msra.gmra.mrb[4].mxu0 %vm222_vm2, %v476_v13 }
 0x6ff   :  { %2315 = vmatpush3.xpose.msk.msra.mxu0 %vm222_vm2, %v651_v14  ;;  %2316 = vmatprep.mubr.msk.f32.mxu0 %vm2654_vm1, %v2653_v15 }
 0x700   :  { %2319 = vmatprep.subr.mxu0 %v2653_v15 }
 0x702   :  { %2317 = vmatmul.mubr.msk.f32.vlgmr.msra.gmra.mrb[6].mxu0 %vm222_vm2, %v649_v16 }
 0x703   :  { %2321 = vmatprep.mubr.msk.f32.mxu0 %vm2654_vm1, %v2653_v15 }
 0x7d1   :  { %v549_v20 = vpop.f32.mrb[4].mxu0 }
 0x7d2   :  { %v553_v21 = vpack.c.bf16 %v549_v20, %v549_v20  ;;  %v2301_v22 = vpop.f32.mrb[5].mxu0 }
 0x7d4   :  { %2305 = vmatmul.mubr.msk.bf16.vlgmr.msra.gmra.mrb[8].mxu1 %vm222_vm2, %v553_v21 }
 0x7d5   :  { %v722_v24 = vpop.f32.mrb[6].mxu0  ;;  %2309 = vmatpush3.bf16.msra.mxu1 %v606_v23  ;;  %2310 = vmatprep.mubr.msk.bf16.mxu1 %vm2654_vm1, %v2653_v15 }
 0x7d6   :  { %v726_v25 = vsel %vm2835_vm3, %v722_v24, -1e+09  ;;  %v2318_v26 = vpop.f32.mrb[7].mxu0  ;;  %2324 = vmatprep.subr.bf16.mxu1 %v2653_v15 }
 0x7d7   :  { %v727_v27 = vsel %vm222_vm2, %v726_v25, -inf }
 0x7d8   :  { %728 = vmax.xlane.f32.xlu1 %v727_v27 }
 0x7e0   :  { %2311 = vmatmul.mubr.msk.bf16.vlgmr.msra.gmra.mrb[8].mxu1 %vm222_vm2, %v385_v28 }
 0x7e1   :  { %2326 = vmatprep.mubr.msk.bf16.mxu1 %vm2654_vm1, %v2653_v15  ;;  %2325 = vmatpush3.bf16.msra.mxu1 %v820_v44 }
 0x7e2   :  { %2340 = vmatprep.subr.bf16.mxu1 %v2653_v15 }
 0x7e9   :  { %865 = vrot.lane.b32.xlu1 %v2818_v36, %s2661_s16 }
 0x7ed   :  { %863 = vrot.lane.b32.xlu1 %v2818_v36, %s2662_s18 }
 0x865   :  { %v729_v29 = vpop.xlane.xlu1 %728 }
 0x866   :  { %v730_v30 = vsub.f32 %v726_v25, %v729_v29 }
 0x868   :  { %v731_v31 = vmul.f32 1.442695, %v730_v30 }
 0x869   :  { %v866_v38 = vpop.permute.xlu1 %865 }
 0x86a   :  { %2496 = vpow2.f32 %v731_v31 }
 0x86d   :  { %v864_v41 = vpop.permute.xlu1 %863 }
 0x874   :  { %v2497_v32 = vpop.eup %2496 }
 0x875   :  { %v733_v33 = vsel %vm222_vm2, %v2497_v32, 0.0 }
 0x876   :  { %734 = vadd.xlane.f32.xlu0 %v733_v33 }
 0x88c   :  { %738 = vrot.lane.b32.xlu0 %v2818_v36, %s2663_s22 }
 0x903   :  { %v735_v34 = vpop.xlane.xlu0 %734 }
 0x904   :  { %2498 = vrcp.f32 %v735_v34 }
 0x907   :  { %v739_v35 = vpop.permute.xlu0 %738 }
 0x908   :  { %2320 = vmatpush3.msra.mxu0 %v739_v35 }
 0x909   :  { %2330 = vmatprep.subr.mxu0 %v2653_v15 }
 0x90e   :  { %v2499_v37 = vpop.eup %2498 }
 0x90f   :  { %v737_v40 = vmul.f32 %v2499_v37, %v2497_v32 }
 0x911   :  { %2322 = vmatmul.mubr.msk.f32.vlgmr.msra.gmra.mrb[8].mxu0 %vm222_vm2, %v737_v40 }
 0x912   :  { %2331 = vmatpush3.xpose.msk.msra.mxu0 %vm222_vm2, %v866_v38  ;;  %2332 = vmatprep.mubr.msk.f32.mxu0 %vm2654_vm1, %v2653_v15 }
 0x913   :  { %2335 = vmatprep.subr.mxu0 %v2653_v15 }
 0x915   :  { %2333 = vmatmul.mubr.msk.f32.vlgmr.msra.gmra.mrb[10].mxu0 %vm222_vm2, %v864_v41 }
 0x916   :  { %2337 = vmatprep.mubr.msk.f32.mxu0 %vm2654_vm1, %v2653_v15 }
 0x9e4   :  { %v810_v46 = vpop.f32.mrb[8].mxu0 }
 0x9e5   :  { %v814_v47 = vpack.c.bf16 %v810_v46, %v810_v46  ;;  %v2323_v48 = vpop.f32.mrb[9].mxu0  ;;  %v1416_v46 = vld [vmem:[#allocation8 + $0x4] sm:$0xf] }
 0x9e6   :  { %v1248_v48 = vld [vmem:[#allocation8] sm:$0xf] }
 0x9e7   :  { %2327 = vmatmul.mubr.msk.bf16.vlgmr.msra.gmra.mrb[8].mxu1 %vm222_vm2, %v814_v47  ;;  %v1421_v47 = vsel %vm558_vm4, %v1416_v46, 0 }
 0x9e8   :  { %v937_v49 = vpop.f32.mrb[10].mxu0  ;;  %2342 = vmatprep.mubr.msk.bf16.mxu1 %vm2654_vm1, %v2653_v15  ;;  %2341 = vmatpush3.bf16.msra.mxu1 %v1035_v62 }
 0x9e9   :  { %v941_v50 = vsel %vm2835_vm3, %v937_v49, -1e+09  ;;  %v2334_v51 = vpop.f32.mrb[11].mxu0  ;;  %2366 = vmatprep.subr.bf16.mxu1 %v2653_v15 }
 0x9ea   :  { %v942_v52 = vsel %vm222_vm2, %v941_v50, -inf }
 0x9eb   :  { %943 = vmax.xlane.f32.xlu0 %v942_v52  ;;  %v1467_v52 = vsel %vm558_vm4, %v1248_v48, 0 }
 0xa01   :  { %953 = vrot.lane.b32.xlu0 %v2818_v36, %s2664_s2 }
 0xa78   :  { %v944_v53 = vpop.xlane.xlu0 %943 }
 0xa79   :  { %v945_v54 = vsub.f32 %v941_v50, %v944_v53 }
 0xa7b   :  { %v946_v55 = vmul.f32 1.442695, %v945_v54 }
 0xa7c   :  { %v954_v56 = vpop.permute.xlu0 %953 }
 0xa7d   :  { %2500 = vpow2.f32 %v946_v55  ;;  %2336 = vmatpush3.msra.mxu0 %v954_v56 }
 0xa7e   :  { %2346 = vmatprep.subr.mxu0 %v2653_v15 }
 0xa87   :  { %v2501_v57 = vpop.eup %2500 }
 0xa88   :  { %v948_v45 = vsel %vm222_vm2, %v2501_v57, 0.0 }
 0xa89   :  { %949 = vadd.xlane.f32.xlu1 %v948_v45 }
 0xa9a   :  { %1083 = vrot.lane.b32.xlu1 %v2820_v39, %s2655_s28 }
 0xb16   :  { %v950_v58 = vpop.xlane.xlu1 %949 }
 0xb17   :  { %2502 = vrcp.f32 %v950_v58 }
 0xb1a   :  { %v1084_v36 = vpop.permute.xlu1 %1083 }
 0xb21   :  { %v2503_v59 = vpop.eup %2502 }
 0xb22   :  { %v952_v60 = vmul.f32 %v2503_v59, %v2501_v57 }
 0xb24   :  { %2338 = vmatmul.mubr.msk.f32.vlgmr.msra.gmra.mrb[12].mxu0 %vm222_vm2, %v952_v60 }
 0xb25   :  { %2347 = vmatpush3.xpose.msk.msra.mxu0 %vm222_vm2, %v1084_v36  ;;  %2348 = vmatprep.mubr.msk.f32.mxu0 %vm2654_vm1, %v2653_v15 }
 0xb26   :  { %2351 = vmatprep.subr.mxu0 %v2653_v15 }
 0xb28   :  { %2349 = vmatmul.mubr.msk.f32.vlgmr.msra.gmra.mrb[14].mxu0 %vm222_vm2, %v2820_v39 }
 0xb29   :  { %2353 = vmatprep.mubr.msk.f32.mxu0 %vm2654_vm1, %v2653_v15 }
 0xbf7   :  { %v1025_v2 = vpop.f32.mrb[12].mxu0 }
 0xbf8   :  { %v1029_v3 = vpack.c.bf16 %v1025_v2, %v1025_v2  ;;  %v2339_v4 = vpop.f32.mrb[13].mxu0 }
 0xbfa   :  { %2343 = vmatmul.mubr.msk.bf16.vlgmr.msra.gmra.mrb[8].mxu1 %vm222_vm2, %v1029_v3 }
 0xbfb   :  { %v1155_v6 = vpop.f32.mrb[14].mxu0  ;;  %2368 = vmatprep.mubr.msk.bf16.mxu1 %vm2654_vm1, %v2653_v15  ;;  %2367 = vmatpush3.bf16.msra.mxu1 %v1421_v47 }
 0xbfc   :  { %v1159_v7 = vsel %vm2930_vm5, %v1155_v6, -1e+09  ;;  %v2350_v8 = vpop.f32.mrb[15].mxu0  ;;  %2372 = vmatprep.subr.bf16.mxu1 %v2653_v15  ;;  %v1676_v6 = vld [vmem:[#allocation8 + $0x8] sm:$0xf] }
 0xbfd   :  { %v1160_v9 = vsel %vm222_vm2, %v1159_v7, -inf }
 0xbfe   :  { %1161 = vmax.xlane.f32.xlu0 %v1160_v9 }
 0xc14   :  { %1171 = vrot.lane.b32.xlu0 %v2820_v39, %s2647_s1 }
 0xc18   :  { %1249 = vrot.lane.b32.xlu0 %v2820_v39, %s2657_s12 }
 0xc8b   :  { %v1162_v43 = vpop.xlane.xlu0 %1161 }
 0xc8c   :  { %v1163_v10 = vsub.f32 %v1159_v7, %v1162_v43  ;;  %v1681_v7 = vsel %vm558_vm4, %v1676_v6, 0 }
 0xc8e   :  { %v1164_v11 = vmul.f32 1.442695, %v1163_v10 }
 0xc8f   :  { %v1172_v12 = vpop.permute.xlu0 %1171 }
 0xc90   :  { %2504 = vpow2.f32 %v1164_v11  ;;  %2352 = vmatpush3.msra.mxu0 %v1172_v12  ;;  %v2204_v12 = vld [vmem:[%s3087_s5] ss:$0 sm:$0xff] }
 0xc91   :  { %2356 = vmatprep.subr.mxu0 %v2653_v15 }
 0xc93   :  { %v1250_v24 = vpop.permute.xlu0 %1249 }
 0xc9a   :  { %v2505_v13 = vpop.eup %2504 }
 0xc9b   :  { %v1166_v14 = vsel %vm222_vm2, %v2505_v13, 0.0 }
 0xc9c   :  { %1167 = vadd.xlane.f32.xlu1 %v1166_v14 }
 0xcad   :  { %1251 = vrot.lane.b32.xlu1 %v2820_v39, %s2656_s29 }
 0xccd   :  { %v1071_v16 = vpop.f32.mrb[8].mxu1 }
 0xcce   :  { %1078 = vst.msk [vmem:[#allocation2] sm:$0xff] %vm112_vm0, %v1071_v16  ;;  %v2344_v17 = vpop.f32.mrb[9].mxu1 }
 0xccf   :  { %v1074_v18 = vpop.f32.mrb[10].mxu1 }
 0xcd0   :  { %v2345_v19 = vpop.f32.mrb[11].mxu1 }
 0xcd5   :  { %v1940_v8 = vld [vmem:[#allocation2] sm:$0xff] }
 0xcd6   :  { %v1942_v11 = vadd.f32 %v1940_v8, %v2789_v0 }
 0xcd8   :  { %v3017_v18 = vadd.f32 %v2204_v12, %v1942_v11  ;;  %v2205_v11 = vld [vmem:[%s3089_s7] ss:$0 sm:$0xff]  ;;  %s2665_s7 = smov [#allocation13]  }
 0xcda   :  { %v1953_v0 = vsel %vm112_vm0, %v3017_v18, 0.0 }
 0xd29   :  { %v1168_v20 = vpop.xlane.xlu1 %1167 }
 0xd2a   :  { %2506 = vrcp.f32 %v1168_v20 }
 0xd2d   :  { %v1252_v23 = vpop.permute.xlu1 %1251 }
 0xd34   :  { %v2507_v21 = vpop.eup %2506 }
 0xd35   :  { %v1170_v22 = vmul.f32 %v2507_v21, %v2505_v13 }
 0xd37   :  { %2354 = vmatmul.mubr.msk.f32.vlgmr.msra.gmra.mrb[16].mxu0 %vm222_vm2, %v1170_v22 }
 0xd38   :  { %2357 = vmatpush3.xpose.msk.msra.mxu0 %vm222_vm2, %v1252_v23  ;;  %2358 = vmatprep.mubr.msk.f32.mxu0 %vm2654_vm1, %v2653_v15 }
 0xd39   :  { %2361 = vmatprep.subr.mxu0 %v2653_v15 }
 0xd3b   :  { %2359 = vmatmul.mubr.msk.f32.vlgmr.msra.gmra.mrb[18].mxu0 %vm222_vm2, %v1250_v24  ;;  %v1896_v24 = vsel %vm558_vm4, %v1891_v5, 0 }
 0xd3c   :  { %2363 = vmatprep.mubr.msk.f32.mxu0 %vm2654_vm1, %v2653_v15 }
 0xe0a   :  { %v1243_v25 = vpop.f32.mrb[16].mxu0 }
 0xe0b   :  { %v2355_v26 = vpop.f32.mrb[17].mxu0  ;;  %v1247_v57 = vpack.c.bf16 %v1243_v25, %v1243_v25 }
 0xe0e   :  { %v1323_v27 = vpop.f32.mrb[18].mxu0 }
 0xe0f   :  { %v1327_v28 = vsel %vm2930_vm5, %v1323_v27, -1e+09  ;;  %v2360_v29 = vpop.f32.mrb[19].mxu0 }
 0xe10   :  { %v1328_v30 = vsel %vm222_vm2, %v1327_v28, -inf }
 0xe11   :  { %1329 = vmax.xlane.f32.xlu1 %v1328_v30 }
 0xe22   :  { %1511 = vrot.lane.b32.xlu1 %v2820_v39, %s2660_s15 }
 0xe26   :  { %1509 = vrot.lane.b32.xlu1 %v2820_v39, %s2659_s14 }
 0xe9e   :  { %v1330_v31 = vpop.xlane.xlu1 %1329 }
 0xe9f   :  { %v1331_v32 = vsub.f32 %v1327_v28, %v1330_v31 }
 0xea1   :  { %v1332_v33 = vmul.f32 1.442695, %v1331_v32 }
 0xea2   :  { %v1512_v41 = vpop.permute.xlu1 %1511 }
 0xea3   :  { %2508 = vpow2.f32 %v1332_v33 }
 0xea6   :  { %v1510_v44 = vpop.permute.xlu1 %1509 }
 0xead   :  { %v2509_v34 = vpop.eup %2508 }
 0xeae   :  { %v1334_v35 = vsel %vm222_vm2, %v2509_v34, 0.0 }
 0xeaf   :  { %1335 = vadd.xlane.f32.xlu0 %v1334_v35 }
 0xec5   :  { %1339 = vrot.lane.b32.xlu0 %v2820_v39, %s2658_s13 }
 0xf3c   :  { %v1336_v37 = vpop.xlane.xlu0 %1335 }
 0xf3d   :  { %2510 = vrcp.f32 %v1336_v37 }
 0xf40   :  { %v1340_v38 = vpop.permute.xlu0 %1339 }
 0xf41   :  { %2362 = vmatpush3.msra.mxu0 %v1340_v38 }
 0xf42   :  { %2378 = vmatprep.subr.mxu0 %v2653_v15 }
 0xf47   :  { %v2511_v40 = vpop.eup %2510 }
 0xf48   :  { %v1338_v42 = vmul.f32 %v2511_v40, %v2509_v34 }
 0xf4a   :  { %2364 = vmatmul.mubr.msk.f32.vlgmr.msra.gmra.mrb[20].mxu0 %vm222_vm2, %v1338_v42 }
 0xf4b   :  { %2379 = vmatpush3.xpose.msk.msra.mxu0 %vm222_vm2, %v1512_v41  ;;  %2380 = vmatprep.mubr.msk.f32.mxu0 %vm2654_vm1, %v2653_v15 }
 0xf4c   :  { %2383 = vmatprep.subr.mxu0 %v2653_v15 }
 0xf4e   :  { %2381 = vmatmul.mubr.msk.f32.vlgmr.msra.gmra.mrb[22].mxu0 %vm222_vm2, %v1510_v44 }
 0xf4f   :  { %2385 = vmatprep.mubr.msk.f32.mxu0 %vm2654_vm1, %v2653_v15 }
0x101d   :  { %v1411_v49 = vpop.f32.mrb[20].mxu0 }
0x101e   :  { %v1415_v50 = vpack.c.bf16 %v1411_v49, %v1411_v49  ;;  %v2365_v51 = vpop.f32.mrb[21].mxu0 }
0x1020   :  { %2369 = vmatmul.mubr.msk.bf16.vlgmr.msra.gmra.mrb[12].mxu1 %vm222_vm2, %v1415_v50 }
0x1021   :  { %v1583_v53 = vpop.f32.mrb[22].mxu0  ;;  %2373 = vmatpush3.bf16.msra.mxu1 %v1467_v52  ;;  %2374 = vmatprep.mubr.msk.bf16.mxu1 %vm2654_vm1, %v2653_v15 }
0x1022   :  { %v1587_v54 = vsel %vm2930_vm5, %v1583_v53, -1e+09  ;;  %v2382_v55 = vpop.f32.mrb[23].mxu0  ;;  %2388 = vmatprep.subr.bf16.mxu1 %v2653_v15  ;;  %v2478_v53 = vld [vmem:[#allocation10] sm:$0xff]  }
0x1023   :  { %v1588_v56 = vsel %vm222_vm2, %v1587_v54, -inf  ;;  %v2481_v55 = vld [vmem:[%s3090_s8 + $0x8] sm:$0xff]  }
0x1024   :  { %1589 = vmax.xlane.f32.xlu0 %v1588_v56 }
0x102c   :  { %2375 = vmatmul.mubr.msk.bf16.vlgmr.msra.gmra.mrb[12].mxu1 %vm222_vm2, %v1247_v57 }
0x102d   :  { %2390 = vmatprep.mubr.msk.bf16.mxu1 %vm2654_vm1, %v2653_v15  ;;  %2389 = vmatpush3.bf16.msra.mxu1 %v1681_v7 }
0x102e   :  { %2404 = vmatprep.subr.bf16.mxu1 %v2653_v15 }
0x103a   :  { %1599 = vrot.lane.b32.xlu0 %v2820_v39, %s2663_s22 }
0x103e   :  { %1724 = vrot.lane.b32.xlu0 %v2820_v39, %s2662_s18 }
0x10b1   :  { %v1590_v45 = vpop.xlane.xlu0 %1589 }
0x10b2   :  { %v1591_v58 = vsub.f32 %v1587_v54, %v1590_v45  ;;  %v2480_v54 = vld [vmem:[%s3090_s8] sm:$0xff]  }
0x10b4   :  { %v1592_v59 = vmul.f32 1.442695, %v1591_v58 }
0x10b5   :  { %v1600_v60 = vpop.permute.xlu0 %1599 }
0x10b6   :  { %2512 = vpow2.f32 %v1592_v59  ;;  %2384 = vmatpush3.msra.mxu0 %v1600_v60 }
0x10b7   :  { %2394 = vmatprep.subr.mxu0 %v2653_v15 }
0x10b9   :  { %v1725_v4 = vpop.permute.xlu0 %1724 }
0x10c0   :  { %v2513_v36 = vpop.eup %2512 }
0x10c1   :  { %v1594_v61 = vsel %vm222_vm2, %v2513_v36, 0.0 }
0x10c2   :  { %1595 = vadd.xlane.f32.xlu1 %v1594_v61 }
0x10d3   :  { %1726 = vrot.lane.b32.xlu1 %v2820_v39, %s2661_s16 }
0x114f   :  { %v1596_v62 = vpop.xlane.xlu1 %1595 }
0x1150   :  { %2514 = vrcp.f32 %v1596_v62 }
0x1153   :  { %v1727_v3 = vpop.permute.xlu1 %1726 }
0x115a   :  { %v2515_v63 = vpop.eup %2514 }
0x115b   :  { %v1598_v2 = vmul.f32 %v2515_v63, %v2513_v36  ;;  %v1977_v36 = vstv %s2165_s25 }
0x115d   :  { %2386 = vmatmul.mubr.msk.f32.vlgmr.msra.gmra.mrb[24].mxu0 %vm222_vm2, %v1598_v2 }
0x115e   :  { %2395 = vmatpush3.xpose.msk.msra.mxu0 %vm222_vm2, %v1727_v3  ;;  %2396 = vmatprep.mubr.msk.f32.mxu0 %vm2654_vm1, %v2653_v15 }
0x115f   :  { %2399 = vmatprep.subr.mxu0 %v2653_v15 }
0x1161   :  { %2397 = vmatmul.mubr.msk.f32.vlgmr.msra.gmra.mrb[26].mxu0 %vm222_vm2, %v1725_v4  ;;  %v1982_v4 = vstv %s2166_s6 }
0x1162   :  { %2401 = vmatprep.mubr.msk.f32.mxu0 %vm2654_vm1, %v2653_v15 }
0x1230   :  { %v1671_v9 = vpop.f32.mrb[24].mxu0 }
0x1231   :  { %v1675_v43 = vpack.c.bf16 %v1671_v9, %v1671_v9  ;;  %v2387_v10 = vpop.f32.mrb[25].mxu0 }
0x1232   :  { %v2483_v10 = vld [vmem:[%s3090_s8 + $0x18] sm:$0xff]  }
0x1233   :  { %2391 = vmatmul.mubr.msk.bf16.vlgmr.msra.gmra.mrb[12].mxu1 %vm222_vm2, %v1675_v43  ;;  %v2482_v43 = vld [vmem:[%s3090_s8 + $0x10] sm:$0xff]   ;;  %s2149_s8 = sshll.u32 %s2665_s7, 4  ;;  %s2150_s8 = int_to_ptr.vmem [resolvable:$true] %s2149_s8 }
0x1234   :  { %v1798_v13 = vpop.f32.mrb[26].mxu0  ;;  %2406 = vmatprep.mubr.msk.bf16.mxu1 %vm2654_vm1, %v2653_v15  ;;  %2405 = vmatpush3.bf16.msra.mxu1 %v1896_v24  ;;  %s2614_s29 = scalar_lea.vmem %s2150_s8, 256  ;;  %p2619_p7 = scmp.lt.s32.totalorder %s2150_s8, %s2150_s8 }
0x1235   :  { %v1802_v14 = vsel %vm2930_vm5, %v1798_v13, -1e+09  ;;  %v2398_v16 = vpop.f32.mrb[27].mxu0  ;;  %2410 = vmatprep.subr.bf16.mxu1 %v2653_v15  ;;  %p2615_p6 = scmp.ne.s32.totalorder %s2150_s8, %s2614_s29  ;;  %p2620_p8 = scmp.lt.s32.totalorder %s2614_s29, %s2614_s29 }
0x1236   :  { %v1803_v17 = vsel %vm222_vm2, %v1802_v14, -inf }
0x1237   :  { %1804 = vmax.xlane.f32.xlu1 %v1803_v17  ;;  %p2621_p9 = por %p2620_p8, %p2619_p7 }
0x1239   :  { %p2622_p10 = pnand %p2621_p9, %p2615_p6 }
0x123b   :  { %1954 = vadd.xlane.f32.xlu1 %v1953_v0 }
0x12c4   :  { %v1805_v19 = vpop.xlane.xlu1 %1804 }
0x12c5   :  { %v1806_v20 = vsub.f32 %v1802_v14, %v1805_v19 }
0x12c7   :  { %v1807_v21 = vmul.f32 1.442695, %v1806_v20 }
0x12c8   :  { %v1955_v33 = vpop.xlane.xlu1 %1954 }
0x12c9   :  { %2516 = vpow2.f32 %v1807_v21  ;;  %v1959_v37 = vmul.f32 0.03125, %v1955_v33 }
0x12cb   :  { %v1961_v40 = vsub.f32 %v3017_v18, %v1959_v37 }
0x12cd   :  { %v1963_v46 = vmul.f32 %v1961_v40, %v1961_v40  ;;  %v1978_v62 = vmul.f32 %v1977_v36, %v1961_v40 }
0x12cf   :  { %v1965_v47 = vsel %vm112_vm0, %v1963_v46, 0.0 }
0x12d3   :  { %v2517_v22 = vpop.eup %2516 }
0x12d4   :  { %v1809_v23 = vsel %vm222_vm2, %v2517_v22, 0.0 }
0x12d5   :  { %1810 = vadd.xlane.f32.xlu0 %v1809_v23 }
0x12eb   :  { %1814 = vrot.lane.b32.xlu0 %v2820_v39, %s2664_s2 }
0x1362   :  { %v1811_v25 = vpop.xlane.xlu0 %1810 }
0x1363   :  { %2518 = vrcp.f32 %v1811_v25 }
0x1366   :  { %v1815_v26 = vpop.permute.xlu0 %1814 }
0x1367   :  { %2400 = vmatpush3.msra.mxu0 %v1815_v26 }
0x1368   :  { %2418 = vmatprep.subr.bf16.mxu0 %v2653_v15 }
0x136d   :  { %v2519_v27 = vpop.eup %2518 }
0x136e   :  { %v1813_v28 = vmul.f32 %v2519_v27, %v2517_v22 }
0x1370   :  { %2402 = vmatmul.mubr.msk.f32.vlgmr.msra.gmra.mrb[28].mxu0 %vm222_vm2, %v1813_v28 }
0x1371   :  { %2426 = vmatprep.mubr.msk.bf16.mxu0 %vm2654_vm1, %v2653_v15  ;;  %2419 = vmatpush3.bf16.msra.mxu0 %v2480_v54 }
0x1372   :  { %2420 = vmatprep.subr.bf16.mxu0 %v2653_v15 }
0x1375   :  { %2421 = vmatpush3.bf16.msra.mxu0 %v2481_v55 }
0x1376   :  { %2422 = vmatprep.subr.bf16.mxu0 %v2653_v15 }
0x1379   :  { %2423 = vmatpush3.bf16.msra.mxu0 %v2482_v43 }
0x137a   :  { %2424 = vmatprep.subr.bf16.mxu0 %v2653_v15 }
0x137d   :  { %2425 = vmatpush3.bf16.msra.mxu0 %v2483_v10 }
0x1443   :  { %v1886_v39 = vpop.f32.mrb[28].mxu0 }
0x1444   :  { %v1890_v29 = vpack.c.bf16 %v1886_v39, %v1886_v39  ;;  %v2403_v30 = vpop.f32.mrb[29].mxu0 }
0x1446   :  { %2407 = vmatmul.mubr.msk.bf16.vlgmr.msra.gmra.mrb[12].mxu1 %vm222_vm2, %v1890_v29 }
0x1447   :  { %2414 = vmatprep.mubr.msk.bf16.mxu1 %vm2654_vm1, %v2653_v15  ;;  %2411 = vmatpush3.bf16.msra.mxu1 %v2478_v53 }
0x1448   :  { %2412 = vmatprep.subr.bf16.mxu1 %v2653_v15  ;;  %v2209_v15 = vld [vmem:[%s3091_s9] ss:$0 sm:$0xff] }
0x1519   :  { %v1932_v31 = vpop.f32.mrb[12].mxu1 }
0x151a   :  { %1939 = vst.msk [vmem:[#allocation2 + $0x8] sm:$0xff] %vm112_vm0, %v1932_v31  ;;  %v2408_v32 = vpop.f32.mrb[13].mxu1 }
0x151b   :  { %v1935_v34 = vpop.f32.mrb[14].mxu1 }
0x151c   :  { %v2409_v35 = vpop.f32.mrb[15].mxu1 }
0x1521   :  { %v1941_v38 = vld [vmem:[#allocation2 + $0x8] sm:$0xff] }
0x1522   :  { %v1943_v41 = vadd.f32 %v1941_v38, %v2794_v1  ;;  %v2479_v1 = vld [vmem:[#allocation10 + $0x8] sm:$0xff]  }
0x1523   :  { %2413 = vmatpush3.bf16.msra.mxu1 %v2479_v1 }
0x1524   :  { %v3036_v42 = vadd.f32 %v2204_v12, %v1943_v41 }
0x1526   :  { %v1956_v44 = vsel %vm112_vm0, %v3036_v42, 0.0 }
0x1527   :  { %1957 = vadd.xlane.f32.xlu1 %v1956_v44 }
0x152b   :  { %1966 = vadd.xlane.f32.xlu1 %v1965_v47 }
0x15b4   :  { %v1958_v48 = vpop.xlane.xlu1 %1957 }
0x15b5   :  { %v1960_v49 = vmul.f32 0.03125, %v1958_v48 }
0x15b7   :  { %v1962_v50 = vsub.f32 %v3036_v42, %v1960_v49 }
0x15b8   :  { %v1967_v56 = vpop.xlane.xlu1 %1966 }
0x15b9   :  { %v1964_v51 = vmul.f32 %v1962_v50, %v1962_v50  ;;  %v1971_v57 = vmul.f32 0.032258064, %v1967_v56  ;;  %v1979_v63 = vmul.f32 %v1977_v36, %v1962_v50 }
0x15bb   :  { %v1968_v52 = vsel %vm112_vm0, %v1964_v51, 0.0  ;;  %v1973_v45 = vadd.f32 1e-06, %v1971_v57 }
0x15bc   :  { %1969 = vadd.xlane.f32.xlu1 %v1968_v52 }
0x15bd   :  { %2520 = vrsqrt.f32 %v1973_v45 }
0x15c7   :  { %v2521_v61 = vpop.eup %2520 }
0x15c8   :  { %v1980_v2 = vmul.f32 %v2521_v61, %v1978_v62 }
0x15ca   :  { %v1983_v8 = vadd.f32 %v1982_v4, %v1980_v2 }
0x1649   :  { %v1970_v58 = vpop.xlane.xlu1 %1969 }
0x164a   :  { %v1972_v59 = vmul.f32 0.032258064, %v1970_v58 }
0x164c   :  { %v1974_v60 = vadd.f32 1e-06, %v1972_v59 }
0x164e   :  { %2522 = vrsqrt.f32 %v1974_v60 }
0x1658   :  { %v2523_v3 = vpop.eup %2522 }
0x1659   :  { %v1981_v6 = vmul.f32 %v2523_v3, %v1979_v63 }
0x165b   :  { %v1984_v7 = vadd.f32 %v1982_v4, %v1981_v6 }
0x165d   :  { %v1985_v9 = vpack.c.bf16 %v1984_v7, %v1983_v8 }
0x165f   :  { %2415 = vmatmul.mubr.msk.bf16.vlgmr.msra.gmra.mrb[16].mxu1 %vm112_vm0, %v1985_v9 }
0x1732   :  { %v2046_v12 = vpop.f32.mrb[16].mxu1 }
0x1733   :  { %v2047_v13 = vadd.f32 %v2205_v11, %v2046_v12  ;;  %v2416_v14 = vpop.f32.mrb[17].mxu1 }
0x1734   :  { %v2049_v16 = vpop.f32.mrb[18].mxu1 }
0x1735   :  { %v2050_v17 = vadd.f32 %v2205_v11, %v2049_v16  ;;  %v2417_v0 = vpop.f32.mrb[19].mxu1  ;;  %v2053_v19 = vmax.f32 %v2047_v13, 0.0 }
0x1737   :  { %v2054_v20 = vmax.f32 %v2050_v17, 0.0 }
0x1739   :  { %v2055_v21 = vpack.c.bf16 %v2054_v20, %v2053_v19 }
0x173b   :  { %2427 = vmatmul.mubr.msk.bf16.vlgmr.msra.gmra.mrb[32].mxu0 %vm2095_vm6, %v2055_v21 }
0x180e   :  { %v2133_v22 = vpop.f32.mrb[32].mxu0 }
0x180f   :  { %v2134_v23 = vadd.f32 %v2209_v15, %v2133_v22  ;;  %v2428_v5 = vpop.f32.mrb[33].mxu0 }
0x1810   :  { %v2136_v24 = vpop.f32.mrb[34].mxu0 }
0x1811   :  { %v2140_v25 = vadd.f32 %v2134_v23, %v3017_v18  ;;  %v2137_v26 = vadd.f32 %v2209_v15, %v2136_v24  ;;  %v2429_v27 = vpop.f32.mrb[35].mxu0 }
0x1813   :  { %2142 = vst.msk [vmem:[#allocation13] sm:$0xff] %vm112_vm0, %v2140_v25  ;;  %v2141_v28 = vadd.f32 %v2137_v26, %v3036_v42 }
0x1815   :  { %2143 = vst.msk [vmem:[#allocation13 + $0x8] sm:$0xff] %vm112_vm0, %v2141_v28 }
0x1816   :  { %2625 = shalt.err (!%p2622_p10)
}
0x1817   :  { %s2626_s12 = scalar_lea.hbm %s3093_s11, 256 }
0x1818   :  { %p2627_p11 = scmp.ne.s32.totalorder %s3093_s11, %s2626_s12  ;;  %p2630_p12 = scmp.lt.u32.totalorder %s2626_s12, %s3093_s11 }
0x181a   :  { %p2632_p13 = pnand %p2630_p12, %p2627_p11 }
0x181c   :  { %2635 = shalt.err (!%p2632_p13)
}
0x181d   :  { %s2666_s18 = smov 128   ;;  %s2667_s22 = smov 8  }
0x181e   :  { %2155 = dma.vmem_to_hbm [thread:$0]  %s2150_s8, 256, %s3093_s11, [#allocation5], %s2666_s18, %s2666_s18, %s2667_s22  }
0x181f   :  { %2644 = dma.done.wait [#allocation5], 256  }
0x1820   :  { %2645 = vsyncadd [#allocation5], 4294967040 }
0x1821   :  { %2159 = vsyncpa [#allocation4], 1 }
0x1822   :  { %2160 = vsyncpa [#allocation9], 1 }
0x1823   :  { %2161 = vsyncpa [#allocation5], 1 }
0x1824   :  { %2162 = vsyncpa [#allocation6], 1 }
0x1825   :  { %2163 = vsyncpa [#allocation12], 1 }

</bundles_post_ra>
